<compile_context>
chip_gen: v6e
topology: v6e:2x2x1
jax: 0.10.0
libtpu: 0.0.40
codegen_flags: <defaults>
</compile_context>

<pallas_src>
import math
from functools import partial

import jax
import jax.numpy as jnp
from jax.experimental import pallas as pl
from jax.experimental.pallas import tpu as pltpu

_USE_BF16_MATMUL = False    # cast MXU operands to bf16 (accumulate f32); for v6e/v7x at scale
_APPROX_RECIPROCAL = True   # EUP fast-path reciprocal in softmax; False = exact divide
_NEG_MASK = -1e9            # finite additive mask (avoids NaN for all-null sequences)


# ----------------------------------------------------------------------------
# Plain-JAX glue (graph construction, normalization, temporal embeddings,
# spatio-temporal fusion).
# ----------------------------------------------------------------------------
def get_graph(history, candidate_size):
    # PyTorch `a[idx] += 1` does NOT accumulate duplicates -> result is binary.
    B, Hs, S = history.shape
    h1 = history[:, :, :-1]
    h2 = history[:, :, 1:]
    mask = (h1 != h2) & (h1 != candidate_size) & (h2 != candidate_size)
    A = jnp.zeros((B, candidate_size, candidate_size), jnp.float32)
    b_idx = jnp.broadcast_to(jnp.arange(B)[:, None, None], h1.shape)
    i = jnp.clip(h1, 0, candidate_size - 1)
    j = jnp.clip(h2, 0, candidate_size - 1)
    return A.at[b_idx, i, j].max(mask.astype(jnp.float32))


def mytransform(A):
    # A += I; D = diag(sqrt(col_sums)); return D @ A @ D   (exactly as in the reference)
    B, C, _ = A.shape
    A = A + jnp.eye(C, dtype=jnp.float32)[None]
    row_sums = A.sum(axis=1)                                   # sum over dim=1, as in torch
    d = jnp.sqrt(row_sums)
    D = d[:, :, None] * jnp.eye(C, dtype=jnp.float32)[None]    # diag_embed
    return D @ A @ D


def generate_temporal_embeddings(max_time, embed_dim):
    t = jnp.arange(max_time, dtype=jnp.float32)[:, None]
    idx = jnp.arange(0, embed_dim, 2, dtype=jnp.float32)[None, :]
    denom = 10000.0 ** (idx / embed_dim)
    arg = t / denom
    emb = jnp.zeros((max_time, embed_dim), jnp.float32)
    emb = emb.at[:, 0::2].set(jnp.sin(arg))
    emb = emb.at[:, 1::2].set(jnp.cos(arg))
    return emb


def fuse_spatial_temporal(pos_emb, history, temporal, dim, null_emb, C, type_):
    is_null = history == C
    if type_ == 0:
        B, Hs, S = history.shape
        expanded_t = temporal[None, None]                       # (1,1,S,2D)
        null_plus = null_emb[None, None, None] + expanded_t     # (1,1,S,2D)
        idx = jnp.clip(history, 0, C - 1)
        b_idx = jnp.arange(B)[:, None, None]
        gathered = pos_emb[b_idx, idx]                          # (B,Hs,S,2D)
        pos_plus = gathered + expanded_t
        return jnp.where(is_null[..., None], null_plus, pos_plus)
    else:
        B, S = history.shape
        expanded_t = temporal[None]                             # (1,S,2D)
        null_plus = null_emb[None, None] + expanded_t           # (1,S,2D)
        idx = jnp.clip(history, 0, C - 1)
        b_idx = jnp.arange(B)[:, None]
        gathered = pos_emb[b_idx, idx]                          # (B,S,2D)
        pos_plus = gathered + expanded_t
        return jnp.where(is_null[..., None], null_plus, pos_plus)


# ----------------------------------------------------------------------------
# In-kernel helpers
# ----------------------------------------------------------------------------
def _mm(a, b):
    if _USE_BF16_MATMUL:
        a = a.astype(jnp.bfloat16)
        b = b.astype(jnp.bfloat16)
    return jnp.dot(a, b, preferred_element_type=jnp.float32)


def _bmm(eq, a, b):
    if _USE_BF16_MATMUL:
        a = a.astype(jnp.bfloat16)
        b = b.astype(jnp.bfloat16)
    return jnp.einsum(eq, a, b, preferred_element_type=jnp.float32)


def _softmax_lastdim(s):
    s = s - jnp.max(s, axis=-1, keepdims=True)
    p = jnp.exp(s)
    return p * pl.reciprocal(jnp.sum(p, axis=-1, keepdims=True),
                             approx=_APPROX_RECIPROCAL)


# ----------------------------------------------------------------------------
# Fused Pallas kernel: MHA (history + current) -> windowed cross-attention ->
# aggregation -> candidate logits.  Whole batch in one grid step.
# ----------------------------------------------------------------------------
def _trill_fused_kernel(x_ref, km_ref, band_ref,
                        wqkv_ref, bqkv_ref, wo_h_ref, bo_ref,
                        wca_w_ref, wca_b_ref,
                        ial_w_ref, ial_b_ref, embt_ref,
                        out_ref):
    B, N, S, E = x_ref.shape          # N = Hs + 1 (current sequence stacked last)
    Hs = N - 1
    BN = B * N
    R = BN * S
    num_heads = wqkv_ref.shape[1]
    hd = wqkv_ref.shape[3]
    C_pad = embt_ref.shape[1]

    x2 = x_ref[...].reshape(R, E)     # all B*(Hs+1) sequences, row-major
    km = km_ref[...]                  # (BN, S)   additive key mask (0 / -1e9)
    band = band_ref[...]              # (Hs*S, S) additive band mask (0 / -1e9)

    # --- masked multi-head self-attention over all BN sequences at once -----
    # Per-head weights are pre-split on the host (no lane-axis slicing), and
    # the output projection is a sum of per-head partials (no lane concat).
    scale = 1.0 / math.sqrt(hd)
    mmsa_flat = jnp.zeros((R, E), jnp.float32)
    for h in range(num_heads):        # static unroll (num_heads is tiny)
        q = (_mm(x2, wqkv_ref[0, h]) + bqkv_ref[0, h]).reshape(BN, S, hd)
        k = (_mm(x2, wqkv_ref[1, h]) + bqkv_ref[1, h]).reshape(BN, S, hd)
        v = (_mm(x2, wqkv_ref[2, h]) + bqkv_ref[2, h]).reshape(BN, S, hd)
        s = _bmm("nqd,nkd->nqk", q, k) * scale + km[:, None, :]
        p = _softmax_lastdim(s)
        ctx = _bmm("nqk,nkd->nqd", p, v).reshape(R, hd)
        mmsa_flat = mmsa_flat + _mm(ctx, wo_h_ref[h])     # sublane-aligned wo rows
    mmsa_flat = mmsa_flat + bo_ref[...]

    mmsa = mmsa_flat.reshape(B, N, S, E)
    mmsa_hist = mmsa[:, :Hs].reshape(B, Hs * S, E)        # (B, Hs*S, E)
    mmsa_cur = mmsa[:, Hs]                                # (B, S, E)

    # --- window-based single-head cross attention ----------------------------
    # query = history MHA output; key/value = current MHA output (no Hs copy).
    rows_h = B * Hs * S
    q_c = (_mm(mmsa_hist.reshape(rows_h, E), wca_w_ref[0])
           + wca_b_ref[0]).reshape(B, Hs * S, E)
    cur2 = mmsa_cur.reshape(B * S, E)
    k_c = (_mm(cur2, wca_w_ref[1]) + wca_b_ref[1]).reshape(B, S, E)
    v_c = (_mm(cur2, wca_w_ref[2]) + wca_b_ref[2]).reshape(B, S, E)

    s = _bmm("bqe,bke->bqk", q_c, k_c) * (1.0 / math.sqrt(E)) + band[None]
    p = _softmax_lastdim(s)
    ctx_c = _bmm("bqk,bke->bqe", p, v_c).reshape(rows_h, E)
    wca = (_mm(ctx_c, wca_w_ref[3]) + wca_b_ref[3]).reshape(B, Hs, S, E)

    # --- aggregation (mean over history) + candidate logits ------------------
    acc = wca[:, 0]
    for j in range(1, Hs):            # static unroll over Hs
        acc = acc + wca[:, j]
    fused = acc * (1.0 / Hs) + mmsa_cur                   # (B, S, E)

    z = jnp.maximum(_mm(fused.reshape(B * S, E), ial_w_ref[...]) + ial_b_ref[...],
                    0.0)
    logits = _mm(z, embt_ref[...])                        # (B*S, C_pad) lane-dense
    out_ref[...] = logits.reshape(B, S, C_pad)


def fused_attention_logits(fused_all, keymask2d, band_tiled, kp):
    B, N, S, E = fused_all.shape
    C_pad = kp["emb_t_pad"].shape[1]

    def full(shape):
        nd = len(shape)
        return pl.BlockSpec(shape, lambda i, nd=nd: (0,) * nd)

    operands = (fused_all, keymask2d, band_tiled,
                kp["mmsa_wqkv_h"], kp["mmsa_bqkv_h"], kp["mmsa_wo_h"], kp["mmsa_bo"],
                kp["wca_w"], kp["wca_b"],
                kp["ial_wt"], kp["ial_b"], kp["emb_t_pad"])

    return pl.pallas_call(
        _trill_fused_kernel,
        out_shape=jax.ShapeDtypeStruct((B, S, C_pad), jnp.float32),
        grid=(1,),   # single step: whole batch (single-TC v5e/v6e); see v7x TODO above
        in_specs=[full(op.shape) for op in operands],
        out_specs=full((B, S, C_pad)),
        compiler_params=pltpu.CompilerParams(
            dimension_semantics=("arbitrary",),
            vmem_limit_bytes=32 * 1024 * 1024),
    )(*operands)


# ----------------------------------------------------------------------------
# One-time parameter preparation (transpose / head-split / pack / pad).
# ----------------------------------------------------------------------------
def prepare_params(params, *, num_heads):
    dim = params["gcn_w"].shape[0]
    E = 2 * dim
    hd = E // num_heads
    kp = {}
    kp["emb0"] = params["embedding"][0]                      # (C, dim)
    kp["null_embedding"] = params["null_embedding"]          # (E,)
    kp["gcn_wt"] = params["gcn_w"].T                         # (dim, dim)
    kp["gcn_b"] = params["gcn_b"]                            # (dim,)

    m = params["mmsa"]

    def split_heads(w_t):                                    # (E,E) -> (H,E,hd)
        return w_t.reshape(E, num_heads, hd).transpose(1, 0, 2)

    def split_bias(b):                                       # (E,) -> (H,1,hd)
        return b.reshape(num_heads, 1, hd)

    kp["mmsa_wqkv_h"] = jnp.stack([split_heads(m["wq"].T),
                                   split_heads(m["wk"].T),
                                   split_heads(m["wv"].T)], axis=0)   # (3,H,E,hd)
    kp["mmsa_bqkv_h"] = jnp.stack([split_bias(m["bq"]),
                                   split_bias(m["bk"]),
                                   split_bias(m["bv"])], axis=0)      # (3,H,1,hd)
    kp["mmsa_wo_h"] = m["wo"].T.reshape(num_heads, hd, E)             # (H,hd,E)
    kp["mmsa_bo"] = m["bo"].reshape(1, E)

    w = params["wca"]
    kp["wca_w"] = jnp.stack([w["wq"].T, w["wk"].T, w["wv"].T, w["wo"].T], 0)  # (4,E,E)
    kp["wca_b"] = jnp.stack([w["bq"], w["bk"], w["bv"], w["bo"]], 0).reshape(4, 1, E)

    kp["ial_wt"] = params["ial_w"].T                         # (E, dim)
    kp["ial_b"] = params["ial_b"].reshape(1, dim)

    emb_t = params["embedding"][0].T                         # (dim, C)
    C = emb_t.shape[1]
    C_pad = ((C + 127) // 128) * 128                         # lane-dense output
    kp["emb_t_pad"] = jnp.pad(emb_t, ((0, 0), (0, C_pad - C)))
    return kp


# ----------------------------------------------------------------------------
# TrillNet forward
# ----------------------------------------------------------------------------
def trillnet_forward(kp, history, current, *, dim, num_heads, window_size,
                     candidate_size):
    B, Hs, S = history.shape
    C = candidate_size
    E = 2 * dim

    A = get_graph(history, C)
    A = mytransform(A)

    # GCN: (B,C,C)x(C,dim)x(dim,dim) is nanoseconds of MXU work — plain XLA
    # (no dedicated pallas_call; launch + HBM round trip would dominate).
    Eg = jnp.maximum(jnp.matmul(jnp.matmul(A, kp["emb0"]), kp["gcn_wt"])
                     + kp["gcn_b"], 0.0)                     # (B, C, dim)
    Ebatch = jnp.broadcast_to(kp["emb0"][None], (B, C, dim))
    pos_embeddings = jnp.concatenate([Eg, Ebatch], axis=-1)  # (B, C, E)

    temporal = generate_temporal_embeddings(S, E)            # (S, E)

    fused_hist = fuse_spatial_temporal(pos_embeddings, history, temporal, dim,
                                       kp["null_embedding"], C, 0)   # (B,Hs,S,E)
    fused_cur = fuse_spatial_temporal(pos_embeddings, current, temporal, dim,
                                      kp["null_embedding"], C, 1)    # (B,S,E)
    # Stack the current sequence as the (Hs+1)-th row: one kernel computes
    # both MHA passes (shared weights) for the whole batch.
    fused_all = jnp.concatenate([fused_hist, fused_cur[:, None]], axis=1)  # (B,Hs+1,S,E)

    neg = jnp.float32(_NEG_MASK)
    hist_null = history == C                                 # (B, Hs, S)
    cur_null = current == C                                  # (B, S)
    all_null = jnp.concatenate([hist_null, cur_null[:, None, :]], axis=1)
    keymask = jnp.where(all_null, neg, jnp.float32(0.0)).reshape(B * (Hs + 1), S)

    idx = jnp.arange(S)
    band = jnp.where(jnp.abs(idx[:, None] - idx[None, :]) < window_size,
                     jnp.float32(0.0), neg)                  # (S, S), hoisted
    band_tiled = jnp.tile(band, (Hs, 1))                     # (Hs*S, S)

    logits_pad = fused_attention_logits(fused_all, keymask, band_tiled, kp)
    return logits_pad[..., :C]                               # (B, S, C)


# ----------------------------------------------------------------------------
# Deterministic parameter init (shapes from TrillNet.__init__)
# ----------------------------------------------------------------------------
def init_params(key, dim, candidate_size):
    E = 2 * dim
    keys = jax.random.split(key, 16)

    def linear(k, out_f, in_f):
        k1, k2 = jax.random.split(k)
        bound = 1.0 / math.sqrt(in_f)
        w = jax.random.uniform(k1, (out_f, in_f), jnp.float32, -bound, bound)
        b = jax.random.uniform(k2, (out_f,), jnp.float32, -bound, bound)
        return w, b

    params = {}
    params["embedding"] = jax.random.normal(keys[0], (1, candidate_size, dim), jnp.float32)
    params["null_embedding"] = jax.random.uniform(keys[1], (E,), jnp.float32)
    params["gcn_w"], params["gcn_b"] = linear(keys[2], dim, dim)

    mmsa = {}
    for i, n in enumerate(["q", "k", "v", "o"]):
        mmsa["w" + n], mmsa["b" + n] = linear(keys[3 + i], E, E)
    params["mmsa"] = mmsa

    wca = {}
    for i, n in enumerate(["q", "k", "v", "o"]):
        wca["w" + n], wca["b" + n] = linear(keys[7 + i], E, E)
    params["wca"] = wca

    params["ial_w"], params["ial_b"] = linear(keys[11], dim, E)
    return params


if __name__ == "__main__":
    dim, num_heads, window_size, candidate_size = 8, 2, 2, 4
    B, Hs, S = 2, 3, 8

    key = jax.random.PRNGKey(0)
    pkey, hkey, ckey = jax.random.split(key, 3)
    params = init_params(pkey, dim, candidate_size)
    kparams = prepare_params(params, num_heads=num_heads)

    # token values in [0, candidate_size]; candidate_size == "null" marker.
    # Finite masking makes even an all-null sequence well-defined (no NaN).
    history = jax.random.randint(hkey, (B, Hs, S), 0, candidate_size + 1, dtype=jnp.int32)
    current = jax.random.randint(ckey, (B, S), 0, candidate_size + 1, dtype=jnp.int32)

    fwd = jax.jit(partial(trillnet_forward, dim=dim, num_heads=num_heads,
                          window_size=window_size, candidate_size=candidate_size))
    out = fwd(kparams, history, current)
    jax.block_until_ready(out)
    assert out.shape == (B, S, candidate_size) and out.dtype == jnp.float32
    assert bool(jnp.all(jnp.isfinite(out)))
    print("KERNEL_OK")
</pallas_src>

<mosaic_0001>
module attributes {stable_mosaic.version = 11 : i64} {
  func.func @_trill_fused_kernel(%arg0: i32, %arg1: memref<2x4x8x16xf32, #tpu.memory_space<vmem>>, %arg2: memref<8x8xf32, #tpu.memory_space<vmem>>, %arg3: memref<24x8xf32, #tpu.memory_space<vmem>>, %arg4: memref<3x2x16x8xf32, #tpu.memory_space<vmem>>, %arg5: memref<3x2x1x8xf32, #tpu.memory_space<vmem>>, %arg6: memref<2x8x16xf32, #tpu.memory_space<vmem>>, %arg7: memref<1x16xf32, #tpu.memory_space<vmem>>, %arg8: memref<4x16x16xf32, #tpu.memory_space<vmem>>, %arg9: memref<4x1x16xf32, #tpu.memory_space<vmem>>, %arg10: memref<16x8xf32, #tpu.memory_space<vmem>>, %arg11: memref<1x8xf32, #tpu.memory_space<vmem>>, %arg12: memref<8x128xf32, #tpu.memory_space<vmem>>, %arg13: memref<2x8x128xf32, #tpu.memory_space<vmem>>) attributes {dimension_semantics = [#tpu.dimension_semantics<arbitrary>], iteration_bounds = array<i64: 1>, scalar_prefetch = 0 : i64, scratch_operands = 0 : i64, tpu.core_type = #tpu.core_type<tc>, window_params = [{pipeline_mode = #tpu.pipeline_mode<synchronous>, transform_indices = @transform_0, window_bounds = array<i64: 2, 4, 8, 16>}, {pipeline_mode = #tpu.pipeline_mode<synchronous>, transform_indices = @transform_1, window_bounds = array<i64: 8, 8>}, {pipeline_mode = #tpu.pipeline_mode<synchronous>, transform_indices = @transform_2, window_bounds = array<i64: 24, 8>}, {pipeline_mode = #tpu.pipeline_mode<synchronous>, transform_indices = @transform_3, window_bounds = array<i64: 3, 2, 16, 8>}, {pipeline_mode = #tpu.pipeline_mode<synchronous>, transform_indices = @transform_4, window_bounds = array<i64: 3, 2, 1, 8>}, {pipeline_mode = #tpu.pipeline_mode<synchronous>, transform_indices = @transform_5, window_bounds = array<i64: 2, 8, 16>}, {pipeline_mode = #tpu.pipeline_mode<synchronous>, transform_indices = @transform_6, window_bounds = array<i64: 1, 16>}, {pipeline_mode = #tpu.pipeline_mode<synchronous>, transform_indices = @transform_7, window_bounds = array<i64: 4, 16, 16>}, {pipeline_mode = #tpu.pipeline_mode<synchronous>, transform_indices = @transform_8, window_bounds = array<i64: 4, 1, 16>}, {pipeline_mode = #tpu.pipeline_mode<synchronous>, transform_indices = @transform_9, window_bounds = array<i64: 16, 8>}, {pipeline_mode = #tpu.pipeline_mode<synchronous>, transform_indices = @transform_10, window_bounds = array<i64: 1, 8>}, {pipeline_mode = #tpu.pipeline_mode<synchronous>, transform_indices = @transform_11, window_bounds = array<i64: 8, 128>}, {pipeline_mode = #tpu.pipeline_mode<synchronous>, transform_indices = @transform_12, window_bounds = array<i64: 2, 8, 128>}]} {
    %c0 = arith.constant 0 : index
    %c0_0 = arith.constant 0 : index
    %c0_1 = arith.constant 0 : index
    %c0_2 = arith.constant 0 : index
    %0 = vector.load %arg1[%c0, %c0_0, %c0_1, %c0_2] : memref<2x4x8x16xf32, #tpu.memory_space<vmem>>, vector<2x4x8x16xf32>
    %1 = vector.shape_cast %0 : vector<2x4x8x16xf32> to vector<64x16xf32>
    %c0_3 = arith.constant 0 : index
    %c0_4 = arith.constant 0 : index
    %2 = vector.load %arg2[%c0_3, %c0_4] : memref<8x8xf32, #tpu.memory_space<vmem>>, vector<8x8xf32>
    %c0_5 = arith.constant 0 : index
    %c0_6 = arith.constant 0 : index
    %3 = vector.load %arg3[%c0_5, %c0_6] : memref<24x8xf32, #tpu.memory_space<vmem>>, vector<24x8xf32>
    %cst = arith.constant 0.000000e+00 : f32
    %4 = vector.broadcast %cst : f32 to vector<64x16xf32>
    %c0_7 = arith.constant 0 : index
    %c0_8 = arith.constant 0 : index
    %c0_9 = arith.constant 0 : index
    %c0_10 = arith.constant 0 : index
    %5 = vector.load %arg4[%c0_7, %c0_8, %c0_9, %c0_10] : memref<3x2x16x8xf32, #tpu.memory_space<vmem>>, vector<1x1x16x8xf32>
    %6 = vector.shape_cast %5 : vector<1x1x16x8xf32> to vector<16x8xf32>
    %cst_11 = arith.constant dense<0.000000e+00> : vector<64x8xf32>
    %7 = tpu.matmul %1, %6, %cst_11 {dimension_numbers = #tpu.dot_dimension_numbers<[1], [0], [0], [1], [0, 0, 1, 1], [], []>} : vector<64x16xf32>, vector<16x8xf32>, vector<64x8xf32> -> vector<64x8xf32>
    %c0_12 = arith.constant 0 : index
    %c0_13 = arith.constant 0 : index
    %c0_14 = arith.constant 0 : index
    %c0_15 = arith.constant 0 : index
    %8 = vector.load %arg5[%c0_12, %c0_13, %c0_14, %c0_15] : memref<3x2x1x8xf32, #tpu.memory_space<vmem>>, vector<1x1x1x8xf32>
    %9 = vector.shape_cast %8 : vector<1x1x1x8xf32> to vector<1x8xf32>
    %10 = vector.broadcast %9 : vector<1x8xf32> to vector<64x8xf32>
    %11 = arith.addf %7, %10 : vector<64x8xf32>
    %12 = vector.shape_cast %11 : vector<64x8xf32> to vector<8x8x8xf32>
    %c1 = arith.constant 1 : index
    %c0_16 = arith.constant 0 : index
    %c0_17 = arith.constant 0 : index
    %c0_18 = arith.constant 0 : index
    %13 = vector.load %arg4[%c1, %c0_16, %c0_17, %c0_18] : memref<3x2x16x8xf32, #tpu.memory_space<vmem>>, vector<1x1x16x8xf32>
    %14 = vector.shape_cast %13 : vector<1x1x16x8xf32> to vector<16x8xf32>
    %cst_19 = arith.constant dense<0.000000e+00> : vector<64x8xf32>
    %15 = tpu.matmul %1, %14, %cst_19 {dimension_numbers = #tpu.dot_dimension_numbers<[1], [0], [0], [1], [0, 0, 1, 1], [], []>} : vector<64x16xf32>, vector<16x8xf32>, vector<64x8xf32> -> vector<64x8xf32>
    %c1_20 = arith.constant 1 : index
    %c0_21 = arith.constant 0 : index
    %c0_22 = arith.constant 0 : index
    %c0_23 = arith.constant 0 : index
    %16 = vector.load %arg5[%c1_20, %c0_21, %c0_22, %c0_23] : memref<3x2x1x8xf32, #tpu.memory_space<vmem>>, vector<1x1x1x8xf32>
    %17 = vector.shape_cast %16 : vector<1x1x1x8xf32> to vector<1x8xf32>
    %18 = vector.broadcast %17 : vector<1x8xf32> to vector<64x8xf32>
    %19 = arith.addf %15, %18 : vector<64x8xf32>
    %20 = vector.shape_cast %19 : vector<64x8xf32> to vector<8x8x8xf32>
    %c2 = arith.constant 2 : index
    %c0_24 = arith.constant 0 : index
    %c0_25 = arith.constant 0 : index
    %c0_26 = arith.constant 0 : index
    %21 = vector.load %arg4[%c2, %c0_24, %c0_25, %c0_26] : memref<3x2x16x8xf32, #tpu.memory_space<vmem>>, vector<1x1x16x8xf32>
    %22 = vector.shape_cast %21 : vector<1x1x16x8xf32> to vector<16x8xf32>
    %cst_27 = arith.constant dense<0.000000e+00> : vector<64x8xf32>
    %23 = tpu.matmul %1, %22, %cst_27 {dimension_numbers = #tpu.dot_dimension_numbers<[1], [0], [0], [1], [0, 0, 1, 1], [], []>} : vector<64x16xf32>, vector<16x8xf32>, vector<64x8xf32> -> vector<64x8xf32>
    %c2_28 = arith.constant 2 : index
    %c0_29 = arith.constant 0 : index
    %c0_30 = arith.constant 0 : index
    %c0_31 = arith.constant 0 : index
    %24 = vector.load %arg5[%c2_28, %c0_29, %c0_30, %c0_31] : memref<3x2x1x8xf32, #tpu.memory_space<vmem>>, vector<1x1x1x8xf32>
    %25 = vector.shape_cast %24 : vector<1x1x1x8xf32> to vector<1x8xf32>
    %26 = vector.broadcast %25 : vector<1x8xf32> to vector<64x8xf32>
    %27 = arith.addf %23, %26 : vector<64x8xf32>
    %28 = vector.shape_cast %27 : vector<64x8xf32> to vector<8x8x8xf32>
    "tpu.trace_start"() <{level = 10 : i32, message = "nqd,nkd->nqk"}> : () -> ()
    %cst_32 = arith.constant dense<0.000000e+00> : vector<8x8x8xf32>
    %29 = tpu.matmul %12, %20, %cst_32 {dimension_numbers = #tpu.dot_dimension_numbers<[2], [2], [1], [1], [0, 0, 0, 1, 1, 1], [0], [0]>} : vector<8x8x8xf32>, vector<8x8x8xf32>, vector<8x8x8xf32> -> vector<8x8x8xf32>
    "tpu.trace_stop"() : () -> ()
    %cst_33 = arith.constant 0.353553385 : f32
    %30 = vector.broadcast %cst_33 : f32 to vector<8x8x8xf32>
    %31 = arith.mulf %29, %30 : vector<8x8x8xf32>
    %32 = vector.shape_cast %2 : vector<8x8xf32> to vector<8x1x8xf32>
    %33 = vector.broadcast %32 : vector<8x1x8xf32> to vector<8x8x8xf32>
    %34 = arith.addf %31, %33 : vector<8x8x8xf32>
    %cst_34 = arith.constant dense<0xFF800000> : vector<8x8xf32>
    %35 = vector.multi_reduction <maximumf>, %34, %cst_34 [2] : vector<8x8x8xf32> to vector<8x8xf32>
    %36 = vector.shape_cast %35 : vector<8x8xf32> to vector<8x8x1xf32>
    %37 = vector.broadcast %36 : vector<8x8x1xf32> to vector<8x8x8xf32>
    %38 = arith.subf %34, %37 : vector<8x8x8xf32>
    %39 = math.exp %38 : vector<8x8x8xf32>
    %cst_35 = arith.constant dense<0.000000e+00> : vector<8x8xf32>
    %40 = vector.multi_reduction <add>, %39, %cst_35 [2] : vector<8x8x8xf32> to vector<8x8xf32>
    %41 = vector.shape_cast %40 : vector<8x8xf32> to vector<8x8x1xf32>
    %42 = tpu.reciprocal %41 {approx = true} : vector<8x8x1xf32> -> vector<8x8x1xf32>
    %43 = vector.broadcast %42 : vector<8x8x1xf32> to vector<8x8x8xf32>
    %44 = arith.mulf %39, %43 : vector<8x8x8xf32>
    "tpu.trace_start"() <{level = 10 : i32, message = "nqk,nkd->nqd"}> : () -> ()
    %cst_36 = arith.constant dense<0.000000e+00> : vector<8x8x8xf32>
    %45 = tpu.matmul %44, %28, %cst_36 {dimension_numbers = #tpu.dot_dimension_numbers<[2], [1], [1], [2], [0, 0, 0, 1, 1, 2], [0], [0]>} : vector<8x8x8xf32>, vector<8x8x8xf32>, vector<8x8x8xf32> -> vector<8x8x8xf32>
    "tpu.trace_stop"() : () -> ()
    %46 = vector.shape_cast %45 : vector<8x8x8xf32> to vector<64x8xf32>
    %c0_37 = arith.constant 0 : index
    %c0_38 = arith.constant 0 : index
    %c0_39 = arith.constant 0 : index
    %47 = vector.load %arg6[%c0_37, %c0_38, %c0_39] : memref<2x8x16xf32, #tpu.memory_space<vmem>>, vector<1x8x16xf32>
    %48 = vector.shape_cast %47 : vector<1x8x16xf32> to vector<8x16xf32>
    %cst_40 = arith.constant dense<0.000000e+00> : vector<64x16xf32>
    %49 = tpu.matmul %46, %48, %cst_40 {dimension_numbers = #tpu.dot_dimension_numbers<[1], [0], [0], [1], [0, 0, 1, 1], [], []>} : vector<64x8xf32>, vector<8x16xf32>, vector<64x16xf32> -> vector<64x16xf32>
    %50 = arith.addf %4, %49 : vector<64x16xf32>
    %c0_41 = arith.constant 0 : index
    %c1_42 = arith.constant 1 : index
    %c0_43 = arith.constant 0 : index
    %c0_44 = arith.constant 0 : index
    %51 = vector.load %arg4[%c0_41, %c1_42, %c0_43, %c0_44] : memref<3x2x16x8xf32, #tpu.memory_space<vmem>>, vector<1x1x16x8xf32>
    %52 = vector.shape_cast %51 : vector<1x1x16x8xf32> to vector<16x8xf32>
    %cst_45 = arith.constant dense<0.000000e+00> : vector<64x8xf32>
    %53 = tpu.matmul %1, %52, %cst_45 {dimension_numbers = #tpu.dot_dimension_numbers<[1], [0], [0], [1], [0, 0, 1, 1], [], []>} : vector<64x16xf32>, vector<16x8xf32>, vector<64x8xf32> -> vector<64x8xf32>
    %c0_46 = arith.constant 0 : index
    %c1_47 = arith.constant 1 : index
    %c0_48 = arith.constant 0 : index
    %c0_49 = arith.constant 0 : index
    %54 = vector.load %arg5[%c0_46, %c1_47, %c0_48, %c0_49] : memref<3x2x1x8xf32, #tpu.memory_space<vmem>>, vector<1x1x1x8xf32>
    %55 = vector.shape_cast %54 : vector<1x1x1x8xf32> to vector<1x8xf32>
    %56 = vector.broadcast %55 : vector<1x8xf32> to vector<64x8xf32>
    %57 = arith.addf %53, %56 : vector<64x8xf32>
    %58 = vector.shape_cast %57 : vector<64x8xf32> to vector<8x8x8xf32>
    %c1_50 = arith.constant 1 : index
    %c1_51 = arith.constant 1 : index
    %c0_52 = arith.constant 0 : index
    %c0_53 = arith.constant 0 : index
    %59 = vector.load %arg4[%c1_50, %c1_51, %c0_52, %c0_53] : memref<3x2x16x8xf32, #tpu.memory_space<vmem>>, vector<1x1x16x8xf32>
    %60 = vector.shape_cast %59 : vector<1x1x16x8xf32> to vector<16x8xf32>
    %cst_54 = arith.constant dense<0.000000e+00> : vector<64x8xf32>
    %61 = tpu.matmul %1, %60, %cst_54 {dimension_numbers = #tpu.dot_dimension_numbers<[1], [0], [0], [1], [0, 0, 1, 1], [], []>} : vector<64x16xf32>, vector<16x8xf32>, vector<64x8xf32> -> vector<64x8xf32>
    %c1_55 = arith.constant 1 : index
    %c1_56 = arith.constant 1 : index
    %c0_57 = arith.constant 0 : index
    %c0_58 = arith.constant 0 : index
    %62 = vector.load %arg5[%c1_55, %c1_56, %c0_57, %c0_58] : memref<3x2x1x8xf32, #tpu.memory_space<vmem>>, vector<1x1x1x8xf32>
    %63 = vector.shape_cast %62 : vector<1x1x1x8xf32> to vector<1x8xf32>
    %64 = vector.broadcast %63 : vector<1x8xf32> to vector<64x8xf32>
    %65 = arith.addf %61, %64 : vector<64x8xf32>
    %66 = vector.shape_cast %65 : vector<64x8xf32> to vector<8x8x8xf32>
    %c2_59 = arith.constant 2 : index
    %c1_60 = arith.constant 1 : index
    %c0_61 = arith.constant 0 : index
    %c0_62 = arith.constant 0 : index
    %67 = vector.load %arg4[%c2_59, %c1_60, %c0_61, %c0_62] : memref<3x2x16x8xf32, #tpu.memory_space<vmem>>, vector<1x1x16x8xf32>
    %68 = vector.shape_cast %67 : vector<1x1x16x8xf32> to vector<16x8xf32>
    %cst_63 = arith.constant dense<0.000000e+00> : vector<64x8xf32>
    %69 = tpu.matmul %1, %68, %cst_63 {dimension_numbers = #tpu.dot_dimension_numbers<[1], [0], [0], [1], [0, 0, 1, 1], [], []>} : vector<64x16xf32>, vector<16x8xf32>, vector<64x8xf32> -> vector<64x8xf32>
    %c2_64 = arith.constant 2 : index
    %c1_65 = arith.constant 1 : index
    %c0_66 = arith.constant 0 : index
    %c0_67 = arith.constant 0 : index
    %70 = vector.load %arg5[%c2_64, %c1_65, %c0_66, %c0_67] : memref<3x2x1x8xf32, #tpu.memory_space<vmem>>, vector<1x1x1x8xf32>
    %71 = vector.shape_cast %70 : vector<1x1x1x8xf32> to vector<1x8xf32>
    %72 = vector.broadcast %71 : vector<1x8xf32> to vector<64x8xf32>
    %73 = arith.addf %69, %72 : vector<64x8xf32>
    %74 = vector.shape_cast %73 : vector<64x8xf32> to vector<8x8x8xf32>
    "tpu.trace_start"() <{level = 10 : i32, message = "nqd,nkd->nqk"}> : () -> ()
    %cst_68 = arith.constant dense<0.000000e+00> : vector<8x8x8xf32>
    %75 = tpu.matmul %58, %66, %cst_68 {dimension_numbers = #tpu.dot_dimension_numbers<[2], [2], [1], [1], [0, 0, 0, 1, 1, 1], [0], [0]>} : vector<8x8x8xf32>, vector<8x8x8xf32>, vector<8x8x8xf32> -> vector<8x8x8xf32>
    "tpu.trace_stop"() : () -> ()
    %cst_69 = arith.constant 0.353553385 : f32
    %76 = vector.broadcast %cst_69 : f32 to vector<8x8x8xf32>
    %77 = arith.mulf %75, %76 : vector<8x8x8xf32>
    %78 = vector.shape_cast %2 : vector<8x8xf32> to vector<8x1x8xf32>
    %79 = vector.broadcast %78 : vector<8x1x8xf32> to vector<8x8x8xf32>
    %80 = arith.addf %77, %79 : vector<8x8x8xf32>
    %cst_70 = arith.constant dense<0xFF800000> : vector<8x8xf32>
    %81 = vector.multi_reduction <maximumf>, %80, %cst_70 [2] : vector<8x8x8xf32> to vector<8x8xf32>
    %82 = vector.shape_cast %81 : vector<8x8xf32> to vector<8x8x1xf32>
    %83 = vector.broadcast %82 : vector<8x8x1xf32> to vector<8x8x8xf32>
    %84 = arith.subf %80, %83 : vector<8x8x8xf32>
    %85 = math.exp %84 : vector<8x8x8xf32>
    %cst_71 = arith.constant dense<0.000000e+00> : vector<8x8xf32>
    %86 = vector.multi_reduction <add>, %85, %cst_71 [2] : vector<8x8x8xf32> to vector<8x8xf32>
    %87 = vector.shape_cast %86 : vector<8x8xf32> to vector<8x8x1xf32>
    %88 = tpu.reciprocal %87 {approx = true} : vector<8x8x1xf32> -> vector<8x8x1xf32>
    %89 = vector.broadcast %88 : vector<8x8x1xf32> to vector<8x8x8xf32>
    %90 = arith.mulf %85, %89 : vector<8x8x8xf32>
    "tpu.trace_start"() <{level = 10 : i32, message = "nqk,nkd->nqd"}> : () -> ()
    %cst_72 = arith.constant dense<0.000000e+00> : vector<8x8x8xf32>
    %91 = tpu.matmul %90, %74, %cst_72 {dimension_numbers = #tpu.dot_dimension_numbers<[2], [1], [1], [2], [0, 0, 0, 1, 1, 2], [0], [0]>} : vector<8x8x8xf32>, vector<8x8x8xf32>, vector<8x8x8xf32> -> vector<8x8x8xf32>
    "tpu.trace_stop"() : () -> ()
    %92 = vector.shape_cast %91 : vector<8x8x8xf32> to vector<64x8xf32>
    %c1_73 = arith.constant 1 : index
    %c0_74 = arith.constant 0 : index
    %c0_75 = arith.constant 0 : index
    %93 = vector.load %arg6[%c1_73, %c0_74, %c0_75] : memref<2x8x16xf32, #tpu.memory_space<vmem>>, vector<1x8x16xf32>
    %94 = vector.shape_cast %93 : vector<1x8x16xf32> to vector<8x16xf32>
    %cst_76 = arith.constant dense<0.000000e+00> : vector<64x16xf32>
    %95 = tpu.matmul %92, %94, %cst_76 {dimension_numbers = #tpu.dot_dimension_numbers<[1], [0], [0], [1], [0, 0, 1, 1], [], []>} : vector<64x8xf32>, vector<8x16xf32>, vector<64x16xf32> -> vector<64x16xf32>
    %96 = arith.addf %50, %95 : vector<64x16xf32>
    %c0_77 = arith.constant 0 : index
    %c0_78 = arith.constant 0 : index
    %97 = vector.load %arg7[%c0_77, %c0_78] : memref<1x16xf32, #tpu.memory_space<vmem>>, vector<1x16xf32>
    %98 = vector.broadcast %97 : vector<1x16xf32> to vector<64x16xf32>
    %99 = arith.addf %96, %98 : vector<64x16xf32>
    %100 = vector.shape_cast %99 : vector<64x16xf32> to vector<2x4x8x16xf32>
    %101 = vector.extract_strided_slice %100 {offsets = [0, 0, 0, 0], sizes = [2, 3, 8, 16], strides = [1, 1, 1, 1]} : vector<2x4x8x16xf32> to vector<2x3x8x16xf32>
    %102 = vector.shape_cast %101 : vector<2x3x8x16xf32> to vector<2x24x16xf32>
    %103 = vector.extract_strided_slice %100 {offsets = [0, 3, 0, 0], sizes = [2, 1, 8, 16], strides = [1, 1, 1, 1]} : vector<2x4x8x16xf32> to vector<2x1x8x16xf32>
    %104 = vector.shape_cast %103 : vector<2x1x8x16xf32> to vector<2x8x16xf32>
    %105 = vector.shape_cast %102 : vector<2x24x16xf32> to vector<48x16xf32>
    %c0_79 = arith.constant 0 : index
    %c0_80 = arith.constant 0 : index
    %c0_81 = arith.constant 0 : index
    %106 = vector.load %arg8[%c0_79, %c0_80, %c0_81] : memref<4x16x16xf32, #tpu.memory_space<vmem>>, vector<1x16x16xf32>
    %107 = vector.shape_cast %106 : vector<1x16x16xf32> to vector<16x16xf32>
    %cst_82 = arith.constant dense<0.000000e+00> : vector<48x16xf32>
    %108 = tpu.matmul %105, %107, %cst_82 {dimension_numbers = #tpu.dot_dimension_numbers<[1], [0], [0], [1], [0, 0, 1, 1], [], []>} : vector<48x16xf32>, vector<16x16xf32>, vector<48x16xf32> -> vector<48x16xf32>
    %c0_83 = arith.constant 0 : index
    %c0_84 = arith.constant 0 : index
    %c0_85 = arith.constant 0 : index
    %109 = vector.load %arg9[%c0_83, %c0_84, %c0_85] : memref<4x1x16xf32, #tpu.memory_space<vmem>>, vector<1x1x16xf32>
    %110 = vector.shape_cast %109 : vector<1x1x16xf32> to vector<1x16xf32>
    %111 = vector.broadcast %110 : vector<1x16xf32> to vector<48x16xf32>
    %112 = arith.addf %108, %111 : vector<48x16xf32>
    %113 = vector.shape_cast %112 : vector<48x16xf32> to vector<2x24x16xf32>
    %114 = vector.shape_cast %104 : vector<2x8x16xf32> to vector<16x16xf32>
    %c1_86 = arith.constant 1 : index
    %c0_87 = arith.constant 0 : index
    %c0_88 = arith.constant 0 : index
    %115 = vector.load %arg8[%c1_86, %c0_87, %c0_88] : memref<4x16x16xf32, #tpu.memory_space<vmem>>, vector<1x16x16xf32>
    %116 = vector.shape_cast %115 : vector<1x16x16xf32> to vector<16x16xf32>
    %cst_89 = arith.constant dense<0.000000e+00> : vector<16x16xf32>
    %117 = tpu.matmul %114, %116, %cst_89 {dimension_numbers = #tpu.dot_dimension_numbers<[1], [0], [0], [1], [0, 0, 1, 1], [], []>} : vector<16x16xf32>, vector<16x16xf32>, vector<16x16xf32> -> vector<16x16xf32>
    %c1_90 = arith.constant 1 : index
    %c0_91 = arith.constant 0 : index
    %c0_92 = arith.constant 0 : index
    %118 = vector.load %arg9[%c1_90, %c0_91, %c0_92] : memref<4x1x16xf32, #tpu.memory_space<vmem>>, vector<1x1x16xf32>
    %119 = vector.shape_cast %118 : vector<1x1x16xf32> to vector<1x16xf32>
    %120 = vector.broadcast %119 : vector<1x16xf32> to vector<16x16xf32>
    %121 = arith.addf %117, %120 : vector<16x16xf32>
    %122 = vector.shape_cast %121 : vector<16x16xf32> to vector<2x8x16xf32>
    %c2_93 = arith.constant 2 : index
    %c0_94 = arith.constant 0 : index
    %c0_95 = arith.constant 0 : index
    %123 = vector.load %arg8[%c2_93, %c0_94, %c0_95] : memref<4x16x16xf32, #tpu.memory_space<vmem>>, vector<1x16x16xf32>
    %124 = vector.shape_cast %123 : vector<1x16x16xf32> to vector<16x16xf32>
    %cst_96 = arith.constant dense<0.000000e+00> : vector<16x16xf32>
    %125 = tpu.matmul %114, %124, %cst_96 {dimension_numbers = #tpu.dot_dimension_numbers<[1], [0], [0], [1], [0, 0, 1, 1], [], []>} : vector<16x16xf32>, vector<16x16xf32>, vector<16x16xf32> -> vector<16x16xf32>
    %c2_97 = arith.constant 2 : index
    %c0_98 = arith.constant 0 : index
    %c0_99 = arith.constant 0 : index
    %126 = vector.load %arg9[%c2_97, %c0_98, %c0_99] : memref<4x1x16xf32, #tpu.memory_space<vmem>>, vector<1x1x16xf32>
    %127 = vector.shape_cast %126 : vector<1x1x16xf32> to vector<1x16xf32>
    %128 = vector.broadcast %127 : vector<1x16xf32> to vector<16x16xf32>
    %129 = arith.addf %125, %128 : vector<16x16xf32>
    %130 = vector.shape_cast %129 : vector<16x16xf32> to vector<2x8x16xf32>
    "tpu.trace_start"() <{level = 10 : i32, message = "bqe,bke->bqk"}> : () -> ()
    %cst_100 = arith.constant dense<0.000000e+00> : vector<2x24x8xf32>
    %131 = tpu.matmul %113, %122, %cst_100 {dimension_numbers = #tpu.dot_dimension_numbers<[2], [2], [1], [1], [0, 0, 0, 1, 1, 1], [0], [0]>} : vector<2x24x16xf32>, vector<2x8x16xf32>, vector<2x24x8xf32> -> vector<2x24x8xf32>
    "tpu.trace_stop"() : () -> ()
    %cst_101 = arith.constant 2.500000e-01 : f32
    %132 = vector.broadcast %cst_101 : f32 to vector<2x24x8xf32>
    %133 = arith.mulf %131, %132 : vector<2x24x8xf32>
    %134 = vector.shape_cast %3 : vector<24x8xf32> to vector<1x24x8xf32>
    %135 = vector.broadcast %134 : vector<1x24x8xf32> to vector<2x24x8xf32>
    %136 = arith.addf %133, %135 : vector<2x24x8xf32>
    %cst_102 = arith.constant dense<0xFF800000> : vector<2x24xf32>
    %137 = vector.multi_reduction <maximumf>, %136, %cst_102 [2] : vector<2x24x8xf32> to vector<2x24xf32>
    %138 = vector.shape_cast %137 : vector<2x24xf32> to vector<2x24x1xf32>
    %139 = vector.broadcast %138 : vector<2x24x1xf32> to vector<2x24x8xf32>
    %140 = arith.subf %136, %139 : vector<2x24x8xf32>
    %141 = math.exp %140 : vector<2x24x8xf32>
    %cst_103 = arith.constant dense<0.000000e+00> : vector<2x24xf32>
    %142 = vector.multi_reduction <add>, %141, %cst_103 [2] : vector<2x24x8xf32> to vector<2x24xf32>
    %143 = vector.shape_cast %142 : vector<2x24xf32> to vector<2x24x1xf32>
    %144 = tpu.reciprocal %143 {approx = true} : vector<2x24x1xf32> -> vector<2x24x1xf32>
    %145 = vector.broadcast %144 : vector<2x24x1xf32> to vector<2x24x8xf32>
    %146 = arith.mulf %141, %145 : vector<2x24x8xf32>
    "tpu.trace_start"() <{level = 10 : i32, message = "bqk,bke->bqe"}> : () -> ()
    %cst_104 = arith.constant dense<0.000000e+00> : vector<2x24x16xf32>
    %147 = tpu.matmul %146, %130, %cst_104 {dimension_numbers = #tpu.dot_dimension_numbers<[2], [1], [1], [2], [0, 0, 0, 1, 1, 2], [0], [0]>} : vector<2x24x8xf32>, vector<2x8x16xf32>, vector<2x24x16xf32> -> vector<2x24x16xf32>
    "tpu.trace_stop"() : () -> ()
    %148 = vector.shape_cast %147 : vector<2x24x16xf32> to vector<48x16xf32>
    %c3 = arith.constant 3 : index
    %c0_105 = arith.constant 0 : index
    %c0_106 = arith.constant 0 : index
    %149 = vector.load %arg8[%c3, %c0_105, %c0_106] : memref<4x16x16xf32, #tpu.memory_space<vmem>>, vector<1x16x16xf32>
    %150 = vector.shape_cast %149 : vector<1x16x16xf32> to vector<16x16xf32>
    %cst_107 = arith.constant dense<0.000000e+00> : vector<48x16xf32>
    %151 = tpu.matmul %148, %150, %cst_107 {dimension_numbers = #tpu.dot_dimension_numbers<[1], [0], [0], [1], [0, 0, 1, 1], [], []>} : vector<48x16xf32>, vector<16x16xf32>, vector<48x16xf32> -> vector<48x16xf32>
    %c3_108 = arith.constant 3 : index
    %c0_109 = arith.constant 0 : index
    %c0_110 = arith.constant 0 : index
    %152 = vector.load %arg9[%c3_108, %c0_109, %c0_110] : memref<4x1x16xf32, #tpu.memory_space<vmem>>, vector<1x1x16xf32>
    %153 = vector.shape_cast %152 : vector<1x1x16xf32> to vector<1x16xf32>
    %154 = vector.broadcast %153 : vector<1x16xf32> to vector<48x16xf32>
    %155 = arith.addf %151, %154 : vector<48x16xf32>
    %156 = vector.shape_cast %155 : vector<48x16xf32> to vector<2x3x8x16xf32>
    %157 = vector.extract_strided_slice %156 {offsets = [0, 0, 0, 0], sizes = [2, 1, 8, 16], strides = [1, 1, 1, 1]} : vector<2x3x8x16xf32> to vector<2x1x8x16xf32>
    %158 = vector.shape_cast %157 : vector<2x1x8x16xf32> to vector<2x8x16xf32>
    %159 = vector.extract_strided_slice %156 {offsets = [0, 1, 0, 0], sizes = [2, 1, 8, 16], strides = [1, 1, 1, 1]} : vector<2x3x8x16xf32> to vector<2x1x8x16xf32>
    %160 = vector.shape_cast %159 : vector<2x1x8x16xf32> to vector<2x8x16xf32>
    %161 = arith.addf %158, %160 : vector<2x8x16xf32>
    %162 = vector.extract_strided_slice %156 {offsets = [0, 2, 0, 0], sizes = [2, 1, 8, 16], strides = [1, 1, 1, 1]} : vector<2x3x8x16xf32> to vector<2x1x8x16xf32>
    %163 = vector.shape_cast %162 : vector<2x1x8x16xf32> to vector<2x8x16xf32>
    %164 = arith.addf %161, %163 : vector<2x8x16xf32>
    %cst_111 = arith.constant 0.333333343 : f32
    %165 = vector.broadcast %cst_111 : f32 to vector<2x8x16xf32>
    %166 = arith.mulf %164, %165 : vector<2x8x16xf32>
    %167 = arith.addf %166, %104 : vector<2x8x16xf32>
    %168 = vector.shape_cast %167 : vector<2x8x16xf32> to vector<16x16xf32>
    %c0_112 = arith.constant 0 : index
    %c0_113 = arith.constant 0 : index
    %169 = vector.load %arg10[%c0_112, %c0_113] : memref<16x8xf32, #tpu.memory_space<vmem>>, vector<16x8xf32>
    %cst_114 = arith.constant dense<0.000000e+00> : vector<16x8xf32>
    %170 = tpu.matmul %168, %169, %cst_114 {dimension_numbers = #tpu.dot_dimension_numbers<[1], [0], [0], [1], [0, 0, 1, 1], [], []>} : vector<16x16xf32>, vector<16x8xf32>, vector<16x8xf32> -> vector<16x8xf32>
    %c0_115 = arith.constant 0 : index
    %c0_116 = arith.constant 0 : index
    %171 = vector.load %arg11[%c0_115, %c0_116] : memref<1x8xf32, #tpu.memory_space<vmem>>, vector<1x8xf32>
    %172 = vector.broadcast %171 : vector<1x8xf32> to vector<16x8xf32>
    %173 = arith.addf %170, %172 : vector<16x8xf32>
    %cst_117 = arith.constant 0.000000e+00 : f32
    %174 = vector.broadcast %cst_117 : f32 to vector<16x8xf32>
    %175 = arith.maximumf %173, %174 : vector<16x8xf32>
    %c0_118 = arith.constant 0 : index
    %c0_119 = arith.constant 0 : index
    %176 = vector.load %arg12[%c0_118, %c0_119] : memref<8x128xf32, #tpu.memory_space<vmem>>, vector<8x128xf32>
    %cst_120 = arith.constant dense<0.000000e+00> : vector<16x128xf32>
    %177 = tpu.matmul %175, %176, %cst_120 {dimension_numbers = #tpu.dot_dimension_numbers<[1], [0], [0], [1], [0, 0, 1, 1], [], []>} : vector<16x8xf32>, vector<8x128xf32>, vector<16x128xf32> -> vector<16x128xf32>
    %178 = vector.shape_cast %177 : vector<16x128xf32> to vector<2x8x128xf32>
    %c0_121 = arith.constant 0 : index
    %c0_122 = arith.constant 0 : index
    %c0_123 = arith.constant 0 : index
    %179 = vector.load %arg13[%c0_121, %c0_122, %c0_123] : memref<2x8x128xf32, #tpu.memory_space<vmem>>, vector<2x8x128xf32>
    tpu.vector_store %arg13[%c0_121, %c0_122, %c0_123], %178 {strides = array<i32>} : memref<2x8x128xf32, #tpu.memory_space<vmem>>, vector<2x8x128xf32>,
    return
  }
  func.func @transform_0(%arg0: i32) -> (i32, i32, i32, i32) {
    %c0_i32 = arith.constant 0 : i32
    %c0_i32_0 = arith.constant 0 : i32
    %c0_i32_1 = arith.constant 0 : i32
    %c0_i32_2 = arith.constant 0 : i32
    %c0_i32_3 = arith.constant 0 : i32
    return %c0_i32, %c0_i32_0, %c0_i32_1, %c0_i32_2 : i32, i32, i32, i32
  }
  func.func @transform_1(%arg0: i32) -> (i32, i32) {
    %c0_i32 = arith.constant 0 : i32
    %c0_i32_0 = arith.constant 0 : i32
    %c0_i32_1 = arith.constant 0 : i32
    return %c0_i32, %c0_i32_0 : i32, i32
  }
  func.func @transform_2(%arg0: i32) -> (i32, i32) {
    %c0_i32 = arith.constant 0 : i32
    %c0_i32_0 = arith.constant 0 : i32
    %c0_i32_1 = arith.constant 0 : i32
    return %c0_i32, %c0_i32_0 : i32, i32
  }
  func.func @transform_3(%arg0: i32) -> (i32, i32, i32, i32) {
    %c0_i32 = arith.constant 0 : i32
    %c0_i32_0 = arith.constant 0 : i32
    %c0_i32_1 = arith.constant 0 : i32
    %c0_i32_2 = arith.constant 0 : i32
    %c0_i32_3 = arith.constant 0 : i32
    return %c0_i32, %c0_i32_0, %c0_i32_1, %c0_i32_2 : i32, i32, i32, i32
  }
  func.func @transform_4(%arg0: i32) -> (i32, i32, i32, i32) {
    %c0_i32 = arith.constant 0 : i32
    %c0_i32_0 = arith.constant 0 : i32
    %c0_i32_1 = arith.constant 0 : i32
    %c0_i32_2 = arith.constant 0 : i32
    %c0_i32_3 = arith.constant 0 : i32
    return %c0_i32, %c0_i32_0, %c0_i32_1, %c0_i32_2 : i32, i32, i32, i32
  }
  func.func @transform_5(%arg0: i32) -> (i32, i32, i32) {
    %c0_i32 = arith.constant 0 : i32
    %c0_i32_0 = arith.constant 0 : i32
    %c0_i32_1 = arith.constant 0 : i32
    %c0_i32_2 = arith.constant 0 : i32
    return %c0_i32, %c0_i32_0, %c0_i32_1 : i32, i32, i32
  }
  func.func @transform_6(%arg0: i32) -> (i32, i32) {
    %c0_i32 = arith.constant 0 : i32
    %c0_i32_0 = arith.constant 0 : i32
    %c0_i32_1 = arith.constant 0 : i32
    return %c0_i32, %c0_i32_0 : i32, i32
  }
  func.func @transform_7(%arg0: i32) -> (i32, i32, i32) {
    %c0_i32 = arith.constant 0 : i32
    %c0_i32_0 = arith.constant 0 : i32
    %c0_i32_1 = arith.constant 0 : i32
    %c0_i32_2 = arith.constant 0 : i32
    return %c0_i32, %c0_i32_0, %c0_i32_1 : i32, i32, i32
  }
  func.func @transform_8(%arg0: i32) -> (i32, i32, i32) {
    %c0_i32 = arith.constant 0 : i32
    %c0_i32_0 = arith.constant 0 : i32
    %c0_i32_1 = arith.constant 0 : i32
    %c0_i32_2 = arith.constant 0 : i32
    return %c0_i32, %c0_i32_0, %c0_i32_1 : i32, i32, i32
  }
  func.func @transform_9(%arg0: i32) -> (i32, i32) {
    %c0_i32 = arith.constant 0 : i32
    %c0_i32_0 = arith.constant 0 : i32
    %c0_i32_1 = arith.constant 0 : i32
    return %c0_i32, %c0_i32_0 : i32, i32
  }
  func.func @transform_10(%arg0: i32) -> (i32, i32) {
    %c0_i32 = arith.constant 0 : i32
    %c0_i32_0 = arith.constant 0 : i32
    %c0_i32_1 = arith.constant 0 : i32
    return %c0_i32, %c0_i32_0 : i32, i32
  }
  func.func @transform_11(%arg0: i32) -> (i32, i32) {
    %c0_i32 = arith.constant 0 : i32
    %c0_i32_0 = arith.constant 0 : i32
    %c0_i32_1 = arith.constant 0 : i32
    return %c0_i32, %c0_i32_0 : i32, i32
  }
  func.func @transform_12(%arg0: i32) -> (i32, i32, i32) {
    %c0_i32 = arith.constant 0 : i32
    %c0_i32_0 = arith.constant 0 : i32
    %c0_i32_1 = arith.constant 0 : i32
    %c0_i32_2 = arith.constant 0 : i32
    return %c0_i32, %c0_i32_0, %c0_i32_1 : i32, i32, i32
  }
}

</mosaic_0001>

<bundles_post_ra>
// kernel: trillnet_forward.1
= control target key start
LH: loop header
LB: loop body
LE: loop exit
PB: predicated region body
PF: predicated region fallthrough
CT: control target
= control target key end

     0   :  { %vm62_vm0 = vcmask 130048   ;;  %v5627_v13 = vmov 0.0   ;;  %vm5628_vm1 = vmmov 0   ;;  %vm424_vm2 = vcmask 64512   ;;  %s6348_s3 = inlined_call_operand.vmem [shape: f32[3,2,16,8], index: 3, kind: input, shape index: {}]   ;;  %s6349_s0 = inlined_call_operand.vmem [shape: f32[2,4,8,16], index: 0, kind: input, shape index: {}]   ;;  %s6350_s4 = inlined_call_operand.vmem [shape: f32[3,2,1,8], index: 4, kind: input, shape index: {}]   ;;  %s6351_s1 = inlined_call_operand.vmem [shape: f32[8,8], index: 1, kind: input, shape index: {}]   ;;  %s6352_s5 = inlined_call_operand.vmem [shape: f32[2,8,16], index: 5, kind: input, shape index: {}]   ;;  %s6353_s7 = inlined_call_operand.vmem [shape: f32[4,16,16], index: 7, kind: input, shape index: {}]   ;;  %s6354_s6 = inlined_call_operand.vmem [shape: f32[1,16], index: 6, kind: input, shape index: {}]   ;;  %s6355_s8 = inlined_call_operand.vmem [shape: f32[4,1,16], index: 8, kind: input, shape index: {}]   ;;  %s6356_s2 = inlined_call_operand.vmem [shape: f32[24,8], index: 2, kind: input, shape index: {}]   ;;  %s6357_s9 = inlined_call_operand.vmem [shape: f32[16,8], index: 9, kind: input, shape index: {}]   ;;  %s6358_s11 = inlined_call_operand.vmem [shape: f32[8,128], index: 11, kind: input, shape index: {}]   ;;  %s6359_s10 = inlined_call_operand.vmem [shape: f32[1,8], index: 10, kind: input, shape index: {}]   ;;  %s6360_s12 = inlined_call_operand.vmem [shape: f32[2,8,128], index: 12, kind: output, shape index: {}]  }
   0x1   :  { %v4793_v0 = vld [vmem:[%s6348_s3 + $0x28] sm:$0xff]  ;;  %v4792_v2 = vld [vmem:[%s6348_s3 + $0x20] sm:$0xff]  ;;  %v5722_v6 = vld [vmem:[%s6349_s0 + $0x10] sm:$0xff] }
   0x2   :  { %v54_v1 = vld [vmem:[%s6348_s3 + $0x8] sm:$0xff]  ;;  %5171 = vmatprep.subr.mxu1 %v4793_v0  ;;  %v5707_v3 = vld [vmem:[%s6349_s0] sm:$0xff]  ;;  %v5733_v7 = vld [vmem:[%s6349_s0 + $0x18] sm:$0xff] }
   0x3   :  { %5155 = vmatprep.subr.mxu0 %v54_v1  ;;  %v53_v4 = vld [vmem:[%s6348_s3] sm:$0xff]  ;;  %5172 = vmatpush3.msra.mxu1 %v4793_v0  ;;  %v5715_v5 = vld [vmem:[%s6349_s0 + $0x8] sm:$0xff]  ;;  %v5758_v10 = vld [vmem:[%s6349_s0 + $0x30] sm:$0xff]  ;;  %v5629_v0 = vmov 1966171168  }
   0x4   :  { %5156 = vmatpush3.msra.mxu0 %v54_v1  ;;  %5173 = vmatprep.subr.mxu1 %v4792_v2  ;;  %v5740_v8 = vld [vmem:[%s6349_s0 + $0x20] sm:$0xff]  ;;  %v5751_v9 = vld [vmem:[%s6349_s0 + $0x28] sm:$0xff]  ;;  %v5769_v11 = vld [vmem:[%s6349_s0 + $0x38] sm:$0xff]  ;;  %v1044_v1 = vunpack.c.l.s4 %v5629_v0 }
   0x5   :  { %5175 = vmatprep.mubr.msk.f32.mxu1 %vm62_vm0, %v5707_v3  ;;  %5174 = vmatpush3.msra.mxu1 %v4792_v2  ;;  %v4805_v12 = vld [vmem:[%s6348_s3 + $0x48] sm:$0xff]  ;;  %v4804_v14 = vld [vmem:[%s6348_s3 + $0x40] sm:$0xff]  ;;  %v1046_v2 = vlaneseq }
   0x6   :  { %5157 = vmatprep.subr.mxu0 %v53_v4  ;;  %5176 = vmatmul.mubr.msk.f32.vlgmr.msra.gmra.mxu1 %vm62_vm0, %v5715_v5  ;;  %v4795_v16 = vld [vmem:[%s6350_s4 + $0x2] ss:$0 sm:$0xff]  ;;  %v4783_v19 = vld [vmem:[%s6350_s4] ss:$0 sm:$0xff]  ;;  %v5856_v49 = vld [vmem:[%s6350_s4 + $0x4] ss:$0 sm:$0xff] }
   0x7   :  { %5158 = vmatpush3.msra.mxu0 %v53_v4  ;;  %5159 = vmatprep.mubr.msk.f32.mxu0 %vm62_vm0, %v5707_v3  ;;  %v1045_v4 = vunpack.c.0.s8 %v1044_v1 }
   0x8   :  { %5178 = vmatprep.mubr.msk.f32.mxu1 %vm62_vm0, %v5722_v6  ;;  %5160 = vmatmul.mubr.msk.f32.vlgmr.msra.gmra.mxu0 %vm62_vm0, %v5715_v5 }
   0x9   :  { %5162 = vmatprep.mubr.msk.f32.mxu0 %vm62_vm0, %v5722_v6  ;;  %5187 = vmatprep.subr.mxu0 %v4805_v12 }
   0xa   :  { %5179 = vmatmul.mubr.msk.f32.gmra.mxu1 %vm62_vm0, %v5733_v7  ;;  %5188 = vmatpush3.msra.mxu0 %v4805_v12  ;;  %v1047_v12 = vshrl.u32 %v1046_v2, 7 }
   0xb   :  { %5181 = vmatprep.mubr.msk.f32.mxu1 %vm62_vm0, %v5740_v8  ;;  %5203 = vmatprep.subr.mxu1 %v5627_v13 }
   0xc   :  { %5163 = vmatmul.mubr.msk.f32.gmra.mxu0 %vm62_vm0, %v5733_v7  ;;  %5189 = vmatprep.subr.mxu0 %v4804_v14 }
   0xd   :  { %5165 = vmatprep.mubr.msk.f32.mxu0 %vm62_vm0, %v5740_v8  ;;  %5190 = vmatpush3.msra.mxu0 %v4804_v14  ;;  %v1048_v14 = vsub.s32 %v1045_v4, %v1047_v12 }
   0xe   :  { %5182 = vmatmul.mubr.msk.f32.gmra.mxu1 %vm62_vm0, %v5751_v9  ;;  %5223 = vmatprep.subr.mxu0 %v5627_v13 }
   0xf   :  { %5184 = vmatprep.mubr.msk.f32.mxu1 %vm62_vm0, %v5758_v10 }
  0x10   :  { %5166 = vmatmul.mubr.msk.f32.gmra.mxu0 %vm62_vm0, %v5751_v9 }
  0x11   :  { %5168 = vmatprep.mubr.msk.f32.mxu0 %vm62_vm0, %v5758_v10 }
  0x12   :  { %5185 = vmatmul.mubr.msk.f32.gmra.mxu1 %vm62_vm0, %v5769_v11 }
  0x13   :  { %5205 = vmatprep.mubr.msk.f32.mxu1 %vm5628_vm1, %v5627_v13 }
  0x14   :  { %5169 = vmatmul.mubr.msk.f32.gmra.mxu0 %vm62_vm0, %v5769_v11 }
  0x15   :  { %5191 = vmatprep.mubr.msk.f32.mxu0 %vm62_vm0, %v5707_v3 }
  0x18   :  { %5192 = vmatmul.mubr.msk.f32.vlgmr.msra.gmra.mxu0 %vm62_vm0, %v5715_v5 }
  0x19   :  { %5194 = vmatprep.mubr.msk.f32.mxu0 %vm62_vm0, %v5722_v6 }
  0x1c   :  { %5195 = vmatmul.mubr.msk.f32.gmra.mxu0 %vm62_vm0, %v5733_v7 }
  0x1d   :  { %5197 = vmatprep.mubr.msk.f32.mxu0 %vm62_vm0, %v5740_v8 }
  0x20   :  { %5198 = vmatmul.mubr.msk.f32.gmra.mxu0 %vm62_vm0, %v5751_v9 }
  0x21   :  { %5200 = vmatprep.mubr.msk.f32.mxu0 %vm62_vm0, %v5758_v10 }
  0x24   :  { %5201 = vmatmul.mubr.msk.f32.gmra.mxu0 %vm62_vm0, %v5769_v11 }
  0x25   :  { %5225 = vmatprep.mubr.msk.f32.mxu0 %vm5628_vm1, %v5627_v13 }
  0xc6   :  { %v5177_v15 = vpop.f32.mrf.mxu1 }
  0xc7   :  { %v275_v26 = vadd.f32 %v5177_v15, %v4795_v16  ;;  %v49_v15 = vld [vmem:[%s6351_s1] sm:$0xff] }
  0xc8   :  { %v5161_v17 = vpop.f32.mrf.mxu0  ;;  %v269_v18 = vpop.f32.mrf.mxu1 }
  0xc9   :  { %v270_v20 = vadd.f32 %v4795_v16, %v269_v18  ;;  %v159_v29 = vadd.f32 %v5161_v17, %v4783_v19  ;;  %v1042_v18 = vcombine.high %v49_v15, %v49_v15 }
  0xca   :  { %v153_v21 = vpop.f32.mrf.mxu0  ;;  %v5180_v22 = vpop.f32.mrf.mxu1 }
  0xcb   :  { %5204 = vmatpush3.xpose.msk.msra.mxu1 %vm424_vm2, %v270_v20  ;;  %v154_v23 = vadd.f32 %v4783_v19, %v153_v21  ;;  %v285_v40 = vadd.f32 %v5180_v22, %v4795_v16  ;;  %v1093_v21 = vsub.s32 0, %v1047_v12 }
  0xcc   :  { %5208 = vmatprep.subr.mxu1 %v5627_v13  ;;  %v279_v24 = vpop.f32.mrf.mxu1  ;;  %v5164_v25 = vpop.f32.mrf.mxu0 }
  0xcd   :  { %v280_v32 = vadd.f32 %v4795_v16, %v279_v24  ;;  %v169_v44 = vadd.f32 %v5164_v25, %v4783_v19  ;;  %v1056_v25 = vrot.slane %v1042_v18, %v1048_v14 }
  0xce   :  { %5206 = vmatmul.mubr.msk.f32.vlgmr.msra.gmra.mxu1 %vm424_vm2, %v154_v23  ;;  %v163_v27 = vpop.f32.mrf.mxu0  ;;  %v5183_v28 = vpop.f32.mrf.mxu1 }
  0xcf   :  { %5209 = vmatpush3.xpose.msk.msra.mxu1 %vm424_vm2, %v275_v26  ;;  %5210 = vmatprep.mubr.msk.f32.mxu1 %vm5628_vm1, %v5627_v13  ;;  %v164_v36 = vadd.f32 %v4783_v19, %v163_v27  ;;  %v295_v43 = vadd.f32 %v5183_v28, %v4795_v16 }
  0xd0   :  { %5213 = vmatprep.subr.mxu1 %v5627_v13  ;;  %v289_v30 = vpop.f32.mrf.mxu1  ;;  %v5167_v31 = vpop.f32.mrf.mxu0 }
  0xd1   :  { %v290_v33 = vadd.f32 %v4795_v16, %v289_v30  ;;  %v179_v46 = vadd.f32 %v5167_v31, %v4783_v19 }
  0xd2   :  { %5211 = vmatmul.mubr.msk.f32.vlgmr.msra.gmra.mxu1 %vm424_vm2, %v159_v29  ;;  %v5186_v34 = vpop.f32.mrf.mxu1  ;;  %v173_v35 = vpop.f32.mrf.mxu0 }
  0xd3   :  { %5214 = vmatpush3.xpose.msk.msra.mxu1 %vm424_vm2, %v280_v32  ;;  %5215 = vmatprep.mubr.msk.f32.mxu1 %vm5628_vm1, %v5627_v13  ;;  %v174_v37 = vadd.f32 %v4783_v19, %v173_v35  ;;  %v305_v47 = vadd.f32 %v5186_v34, %v4795_v16  ;;  %v1058_v34 = vcombine.high %v1056_v25, %v1056_v25 }
  0xd4   :  { %5218 = vmatprep.subr.mxu1 %v5627_v13  ;;  %5224 = vmatpush3.xpose.msk.msra.mxu0 %vm424_vm2, %v290_v33  ;;  %v299_v38 = vpop.f32.mrf.mxu1  ;;  %v5170_v39 = vpop.f32.mrf.mxu0 }
  0xd5   :  { %v300_v41 = vadd.f32 %v4795_v16, %v299_v38  ;;  %5233 = vmatprep.subr.mxu0 %v5627_v13  ;;  %v189_v48 = vadd.f32 %v5170_v39, %v4783_v19  ;;  %v1049_v16 = vrot.slane %v49_v15, %v1048_v14 }
  0xd6   :  { %5216 = vmatmul.mubr.msk.f32.vlgmr.msra.gmra.mxu1 %vm424_vm2, %v164_v36  ;;  %v183_v42 = vpop.f32.mrf.mxu0 }
  0xd7   :  { %5219 = vmatpush3.xpose.msk.msra.mxu1 %vm424_vm2, %v285_v40  ;;  %5220 = vmatprep.mubr.msk.f32.mxu1 %vm5628_vm1, %v5627_v13  ;;  %v184_v45 = vadd.f32 %v4783_v19, %v183_v42  ;;  %v1057_v17 = vcombine.high %v1049_v16, %v1049_v16  ;;  %v1065_v22 = vrot.slane %v1049_v16, %v1048_v14 }
  0xd8   :  { %5228 = vmatprep.subr.mxu1 %v5627_v13  ;;  %5226 = vmatmul.mubr.msk.f32.vlgmr.msra.gmra.mxu0 %vm424_vm2, %v174_v37  ;;  %v5193_v50 = vpop.f32.mrf.mxu0  ;;  %v1086_v42 = vrot.slane %v1058_v34, %v1048_v14 }
  0xd9   :  { %5234 = vmatpush3.xpose.msk.msra.mxu0 %vm424_vm2, %v300_v41  ;;  %5235 = vmatprep.mubr.msk.f32.mxu0 %vm5628_vm1, %v5627_v13  ;;  %v391_v51 = vadd.f32 %v5193_v50, %v5856_v49  ;;  %v1079_v19 = vrot.slane %v1057_v17, %v1048_v14  ;;  %v5882_v29 = vrot.slane %v1065_v22, %v1093_v21 }
  0xda   :  { %5221 = vmatmul.mubr.msk.f32.vlgmr.msra.gmra.mxu1 %vm424_vm2, %v169_v44  ;;  %5243 = vmatprep.subr.mxu0 %v5627_v13  ;;  %v385_v52 = vpop.f32.mrf.mxu0  ;;  %v1087_v36 = vcombine.high %v1065_v22, %v1065_v22  ;;  %v1072_v50 = vrot.slane %v1056_v25, %v1048_v14 }
  0xdb   :  { %5229 = vmatpush3.xpose.msk.msra.mxu1 %vm424_vm2, %v295_v43  ;;  %5230 = vmatprep.mubr.msk.f32.mxu1 %vm5628_vm1, %v5627_v13  ;;  %v386_v53 = vadd.f32 %v5856_v49, %v385_v52  ;;  %v5880_v24 = vrot.slane %v1079_v19, %v1093_v21  ;;  %v1089_v33 = vcombine.high %v1079_v19, %v1079_v19 }
  0xdc   :  { %5238 = vmatprep.subr.mxu1 %v5627_v13  ;;  %5236 = vmatmul.mubr.msk.f32.vlgmr.msra.gmra.mxu0 %vm424_vm2, %v184_v45  ;;  %v5196_v54 = vpop.f32.mrf.mxu0  ;;  %v1088_v0 = vcombine.high %v1072_v50, %v1072_v50  ;;  %v5899_v12 = vrot.slane %v1072_v50, %v1093_v21 }
  0xdd   :  { %5245 = vmatprep.mubr.msk.f32.mxu0 %vm5628_vm1, %v5627_v13  ;;  %v5862_v55 = vadd.f32 %v5196_v54, %v5856_v49  ;;  %5244 = vmatpush3.msra.mxu0 %v386_v53  ;;  %v5889_v41 = vrot.slane %v1089_v33, %v1093_v21  ;;  %v5895_v54 = vrot.slane %v1086_v42, %v1093_v21 }
  0xde   :  { %5231 = vmatmul.mubr.msk.f32.vlgmr.msra.gmra.mxu1 %vm424_vm2, %v179_v46  ;;  %v395_v56 = vpop.f32.mrf.mxu0  ;;  %5253 = vmatprep.subr.mxu0 %v5627_v13  ;;  %v5891_v46 = vrot.slane %v1087_v36, %v1093_v21  ;;  %v5905_v19 = vrot.slane %v1088_v0, %v1093_v21 }
  0xdf   :  { %5239 = vmatpush3.xpose.msk.msra.mxu1 %vm424_vm2, %v305_v47  ;;  %5240 = vmatprep.mubr.msk.f32.mxu1 %vm5628_vm1, %v5627_v13  ;;  %v5866_v57 = vadd.f32 %v5856_v49, %v395_v56  ;;  %v1090_v56 = vcombine.high %v1086_v42, %v1086_v42 }
  0xe0   :  { %5248 = vmatprep.subr.mxu1 %v5627_v13  ;;  %v5199_v58 = vpop.f32.mrf.mxu0 }
  0xe1   :  { %v5869_v59 = vadd.f32 %v5199_v58, %v5856_v49  ;;  %v5902_v16 = vrot.slane %v1090_v56, %v1093_v21 }
  0xe2   :  { %5241 = vmatmul.mubr.msk.f32.vlgmr.msra.gmra.mxu1 %vm424_vm2, %v189_v48  ;;  %v405_v60 = vpop.f32.mrf.mxu0 }
  0xe3   :  { %5250 = vmatprep.mubr.msk.f32.mxu1 %vm5628_vm1, %v5627_v13  ;;  %5249 = vmatpush3.msra.mxu1 %v391_v51  ;;  %v5872_v61 = vadd.f32 %v5856_v49, %v405_v60 }
  0xe4   :  { %5258 = vmatprep.subr.mxu1 %v5627_v13  ;;  %v5202_v62 = vpop.f32.mrf.mxu0 }
  0xe5   :  { %v5875_v63 = vadd.f32 %v5202_v62, %v5856_v49 }
  0xe6   :  { %v5884_v31 = vpop.f32.mrf.mxu0 }
 0x18e   :  { %v497_v20 = vpop.f32.mrf.mxu1 }
 0x18f   :  { %v1033_v27 = vmul.f32 0.35355338, %v497_v20 }
 0x190   :  { %v5207_v23 = vpop.f32.mrf.mxu1 }
 0x191   :  { %v1131_v38 = vadd.f32 %v5882_v29, %v1033_v27 }
 0x192   :  { %v573_v26 = vpop.f32.mrf.mxu1 }
 0x193   :  { %v1034_v28 = vmul.f32 0.35355338, %v573_v26  ;;  %v1139_v48 = vsel %vm424_vm2, %v1131_v38, -inf }
 0x194   :  { %v5212_v30 = vpop.f32.mrf.mxu1 }
 0x195   :  { %v1132_v32 = vadd.f32 %v5880_v24, %v1034_v28 }
 0x196   :  { %v649_v35 = vpop.f32.mrf.mxu1 }
 0x197   :  { %v1142_v37 = vsel %vm424_vm2, %v1132_v32, -inf  ;;  %v1035_v43 = vmul.f32 0.35355338, %v649_v35 }
 0x198   :  { %1143 = vmax.xlane.f32.xlu0 %v1142_v37  ;;  %v5217_v39 = vpop.f32.mrf.mxu1  ;;  %v801_v40 = vpop.f32.mrf.mxu0 }
 0x199   :  { %v1133_v62 = vadd.f32 %v5891_v46, %v1035_v43  ;;  %v1037_v1 = vmul.f32 0.35355338, %v801_v40 }
 0x19a   :  { %v725_v44 = vpop.f32.mrf.mxu1  ;;  %v5227_v45 = vpop.f32.mrf.mxu0 }
 0x19b   :  { %v1036_v47 = vmul.f32 0.35355338, %v725_v44  ;;  %v1145_v18 = vsel %vm424_vm2, %v1133_v62, -inf  ;;  %v1135_v25 = vadd.f32 %v5899_v12, %v1037_v1 }
 0x19c   :  { %1140 = vmax.xlane.f32.xlu0 %v1139_v48  ;;  %v5222_v51 = vpop.f32.mrf.mxu1  ;;  %v953_v52 = vpop.f32.mrf.mxu0 }
 0x19d   :  { %v1134_v53 = vadd.f32 %v5889_v41, %v1036_v47  ;;  %v1039_v20 = vmul.f32 0.35355338, %v953_v52  ;;  %v1151_v28 = vsel %vm424_vm2, %v1135_v25, -inf }
 0x19e   :  { %v877_v58 = vpop.f32.mrf.mxu1  ;;  %v5237_v60 = vpop.f32.mrf.mxu0 }
 0x19f   :  { %v1038_v2 = vmul.f32 0.35355338, %v877_v58  ;;  %v1148_v4 = vsel %vm424_vm2, %v1134_v53, -inf  ;;  %v1137_v33 = vadd.f32 %v5905_v19, %v1039_v20 }
 0x1a0   :  { %1149 = vmax.xlane.f32.xlu1 %v1148_v4  ;;  %v5232_v14 = vpop.f32.mrf.mxu1 }
 0x1a1   :  { %v1136_v15 = vadd.f32 %v5895_v54, %v1038_v2  ;;  %v1157_v21 = vsel %vm424_vm2, %v1137_v33, -inf }
 0x1a2   :  { %v1029_v17 = vpop.f32.mrf.mxu1 }
 0x1a3   :  { %v1040_v22 = vmul.f32 0.35355338, %v1029_v17  ;;  %v1154_v23 = vsel %vm424_vm2, %v1136_v15, -inf }
 0x1a4   :  { %1146 = vmax.xlane.f32.xlu1 %v1145_v18  ;;  %1155 = vmax.xlane.f32.xlu0 %v1154_v23  ;;  %v5242_v26 = vpop.f32.mrf.mxu1 }
 0x1a5   :  { %v1138_v27 = vadd.f32 %v5902_v16, %v1040_v22 }
 0x1a7   :  { %v1160_v30 = vsel %vm424_vm2, %v1138_v27, -inf }
 0x1a8   :  { %1152 = vmax.xlane.f32.xlu1 %v1151_v28  ;;  %1161 = vmax.xlane.f32.xlu0 %v1160_v30 }
 0x1ac   :  { %1158 = vmax.xlane.f32.xlu1 %v1157_v21 }
 0x221   :  { %v1144_v34 = vpop.xlane.xlu0 %1143 }
 0x222   :  { %v1164_v35 = vsub.f32 %v1132_v32, %v1144_v34 }
 0x224   :  { %v1173_v36 = vmul.f32 1.442695, %v1164_v35 }
 0x225   :  { %v1141_v37 = vpop.xlane.xlu0 %1140 }
 0x226   :  { %5539 = vpow2.f32 %v1173_v36  ;;  %v1163_v39 = vsub.f32 %v1131_v38, %v1141_v37 }
 0x228   :  { %v1171_v40 = vmul.f32 1.442695, %v1163_v39 }
 0x229   :  { %v1150_v42 = vpop.xlane.xlu1 %1149 }
 0x22a   :  { %5541 = vpow2.f32 %v1171_v40  ;;  %v1166_v43 = vsub.f32 %v1134_v53, %v1150_v42 }
 0x22c   :  { %v1177_v44 = vmul.f32 1.442695, %v1166_v43 }
 0x22d   :  { %v1147_v45 = vpop.xlane.xlu1 %1146  ;;  %v1156_v47 = vpop.xlane.xlu0 %1155 }
 0x22e   :  { %5543 = vpow2.f32 %v1177_v44  ;;  %v1165_v48 = vsub.f32 %v1133_v62, %v1147_v45  ;;  %v1168_v50 = vsub.f32 %v1136_v15, %v1156_v47 }
 0x230   :  { %v1175_v51 = vmul.f32 1.442695, %v1165_v48  ;;  %v1181_v52 = vmul.f32 1.442695, %v1168_v50 }
 0x231   :  { %v1153_v56 = vpop.xlane.xlu1 %1152  ;;  %v1162_v58 = vpop.xlane.xlu0 %1161 }
 0x232   :  { %5545 = vpow2.f32 %v1175_v51  ;;  %v1167_v32 = vsub.f32 %v1135_v25, %v1153_v56  ;;  %v1170_v60 = vsub.f32 %v1138_v27, %v1162_v58 }
 0x233   :  { %v5540_v0 = vpop.eup %5539  ;;  %5547 = vpow2.f32 %v1181_v52 }
 0x234   :  { %v1179_v38 = vmul.f32 1.442695, %v1167_v32  ;;  %v1185_v1 = vmul.f32 1.442695, %v1170_v60  ;;  %v1190_v2 = vsel %vm424_vm2, %v5540_v0, 0.0  ;;  %v4853_v32 = vld [vmem:[%s6348_s3 + $0x38] sm:$0xff] }
 0x235   :  { %v1159_v53 = vpop.xlane.xlu1 %1158  ;;  %1191 = vadd.xlane.f32.xlu0 %v1190_v2  ;;  %v4865_v2 = vld [vmem:[%s6348_s3 + $0x58] sm:$0xff] }
 0x236   :  { %5549 = vpow2.f32 %v1179_v38  ;;  %v1169_v4 = vsub.f32 %v1137_v33, %v1159_v53  ;;  %v4864_v53 = vld [vmem:[%s6348_s3 + $0x50] sm:$0xff] }
 0x237   :  { %v5542_v14 = vpop.eup %5541  ;;  %5551 = vpow2.f32 %v1185_v1  ;;  %v4840_v1 = vld [vmem:[%s6348_s3 + $0x10] sm:$0xff] }
 0x238   :  { %v1183_v62 = vmul.f32 1.442695, %v1169_v4  ;;  %v1187_v15 = vsel %vm424_vm2, %v5542_v14, 0.0 }
 0x239   :  { %1188 = vadd.xlane.f32.xlu1 %v1187_v15 }
 0x23a   :  { %5553 = vpow2.f32 %v1183_v62 }
 0x23b   :  { %v5544_v17 = vpop.eup %5543 }
 0x23c   :  { %v1196_v18 = vsel %vm424_vm2, %v5544_v17, 0.0 }
 0x23d   :  { %1197 = vadd.xlane.f32.xlu0 %v1196_v18 }
 0x23f   :  { %v5546_v20 = vpop.eup %5545 }
 0x240   :  { %v5548_v22 = vpop.eup %5547  ;;  %v1193_v23 = vsel %vm424_vm2, %v5546_v20, 0.0 }
 0x241   :  { %1194 = vadd.xlane.f32.xlu1 %v1193_v23  ;;  %v1202_v25 = vsel %vm424_vm2, %v5548_v22, 0.0  ;;  %v4855_v23 = vld [vmem:[%s6350_s4 + $0x3] ss:$0 sm:$0xff] }
 0x242   :  { %1203 = vadd.xlane.f32.xlu0 %v1202_v25 }
 0x243   :  { %v5550_v26 = vpop.eup %5549 }
 0x244   :  { %v5552_v27 = vpop.eup %5551  ;;  %v1199_v28 = vsel %vm424_vm2, %v5550_v26, 0.0 }
 0x245   :  { %1200 = vadd.xlane.f32.xlu1 %v1199_v28  ;;  %v1208_v30 = vsel %vm424_vm2, %v5552_v27, 0.0 }
 0x246   :  { %1209 = vadd.xlane.f32.xlu0 %v1208_v30 }
 0x247   :  { %v5554_v33 = vpop.eup %5553 }
 0x248   :  { %v1205_v21 = vsel %vm424_vm2, %v5554_v33, 0.0 }
 0x249   :  { %1206 = vadd.xlane.f32.xlu1 %v1205_v21 }
 0x2be   :  { %v1192_v34 = vpop.xlane.xlu0 %1191 }
 0x2bf   :  { %5555 = vrcp.f32 %v1192_v34 }
 0x2c2   :  { %v1189_v35 = vpop.xlane.xlu1 %1188 }
 0x2c3   :  { %5557 = vrcp.f32 %v1189_v35 }
 0x2c6   :  { %v1198_v36 = vpop.xlane.xlu0 %1197 }
 0x2c7   :  { %5559 = vrcp.f32 %v1198_v36 }
 0x2ca   :  { %v1195_v37 = vpop.xlane.xlu1 %1194 }
 0x2cb   :  { %5561 = vrcp.f32 %v1195_v37  ;;  %v1204_v39 = vpop.xlane.xlu0 %1203 }
 0x2cc   :  { %v5556_v40 = vpop.eup %5555  ;;  %5563 = vrcp.f32 %v1204_v39 }
 0x2cd   :  { %v1220_v42 = vmul.f32 %v5556_v40, %v5540_v0  ;;  %v416_v0 = vadd.f32 %v5856_v49, %v5884_v31  ;;  %v4841_v31 = vld [vmem:[%s6348_s3 + $0x18] sm:$0xff] }
 0x2ce   :  { %v1201_v43 = vpop.xlane.xlu1 %1200 }
 0x2cf   :  { %5565 = vrcp.f32 %v1201_v43  ;;  %v1210_v44 = vpop.xlane.xlu0 %1209  ;;  %5251 = vmatmul.mubr.msk.f32.vlgmr.msra.gmra.mxu1 %vm424_vm2, %v1220_v42 }
 0x2d0   :  { %v5558_v45 = vpop.eup %5557  ;;  %5567 = vrcp.f32 %v1210_v44  ;;  %5259 = vmatpush3.msra.mxu1 %v5862_v55  ;;  %5260 = vmatprep.mubr.msk.f32.mxu1 %vm5628_vm1, %v5627_v13 }
 0x2d1   :  { %v1219_v47 = vmul.f32 %v5558_v45, %v5542_v14  ;;  %5268 = vmatprep.subr.mxu1 %v5627_v13 }
 0x2d2   :  { %v1207_v48 = vpop.xlane.xlu1 %1206 }
 0x2d3   :  { %5569 = vrcp.f32 %v1207_v48  ;;  %5246 = vmatmul.mubr.msk.f32.vlgmr.msra.gmra.mxu0 %vm424_vm2, %v1219_v47 }
 0x2d4   :  { %v5560_v50 = vpop.eup %5559  ;;  %5254 = vmatpush3.msra.mxu0 %v5866_v57  ;;  %5255 = vmatprep.mubr.msk.f32.mxu0 %vm5628_vm1, %v5627_v13 }
 0x2d5   :  { %v1222_v51 = vmul.f32 %v5560_v50, %v5544_v17  ;;  %5263 = vmatprep.subr.mxu0 %v5627_v13 }
 0x2d7   :  { %5261 = vmatmul.mubr.msk.f32.vlgmr.msra.gmra.mxu1 %vm424_vm2, %v1222_v51 }
 0x2d8   :  { %v5562_v55 = vpop.eup %5561  ;;  %5269 = vmatpush3.msra.mxu1 %v5869_v59  ;;  %5270 = vmatprep.mubr.msk.f32.mxu1 %vm5628_vm1, %v5627_v13 }
 0x2d9   :  { %v5564_v52 = vpop.eup %5563  ;;  %5278 = vmatprep.subr.mxu1 %v5627_v13  ;;  %v1221_v56 = vmul.f32 %v5562_v55, %v5546_v20 }
 0x2da   :  { %v1224_v58 = vmul.f32 %v5564_v52, %v5548_v22 }
 0x2db   :  { %5256 = vmatmul.mubr.msk.f32.vlgmr.msra.gmra.mxu0 %vm424_vm2, %v1221_v56 }
 0x2dc   :  { %v5566_v57 = vpop.eup %5565  ;;  %5264 = vmatpush3.msra.mxu0 %v5872_v61  ;;  %5271 = vmatmul.mubr.msk.f32.vlgmr.msra.gmra.mxu1 %vm424_vm2, %v1224_v58 }
 0x2dd   :  { %v5568_v59 = vpop.eup %5567  ;;  %5279 = vmatpush3.msra.mxu1 %v5875_v63  ;;  %5265 = vmatprep.mubr.msk.f32.mxu0 %vm5628_vm1, %v5627_v13  ;;  %v1223_v60 = vmul.f32 %v5566_v57, %v5550_v26  ;;  %v4852_v63 = vld [vmem:[%s6348_s3 + $0x30] sm:$0xff] }
 0x2de   :  { %5273 = vmatprep.subr.mxu0 %v5627_v13  ;;  %5280 = vmatprep.mubr.msk.f32.mxu1 %vm5628_vm1, %v5627_v13  ;;  %v1226_v61 = vmul.f32 %v5568_v59, %v5552_v27 }
 0x2df   :  { %5266 = vmatmul.mubr.msk.f32.vlgmr.msra.gmra.mxu0 %vm424_vm2, %v1223_v60  ;;  %5299 = vmatprep.subr.mxu1 %v4853_v32 }
 0x2e0   :  { %v5570_v38 = vpop.eup %5569  ;;  %5274 = vmatpush3.msra.mxu0 %v416_v0  ;;  %5281 = vmatmul.mubr.msk.f32.vlgmr.msra.gmra.mxu1 %vm424_vm2, %v1226_v61 }
 0x2e1   :  { %5300 = vmatpush3.msra.mxu1 %v4853_v32  ;;  %5275 = vmatprep.mubr.msk.f32.mxu0 %vm5628_vm1, %v5627_v13  ;;  %v1225_v49 = vmul.f32 %v5570_v38, %v5554_v33  ;;  %v4843_v33 = vld [vmem:[%s6350_s4 + $0x1] ss:$0 sm:$0xff] }
 0x2e2   :  { %5301 = vmatprep.subr.mxu1 %v4852_v63  ;;  %5303 = vmatprep.mubr.msk.f32.mxu1 %vm62_vm0, %v5707_v3 }
 0x2e3   :  { %5302 = vmatpush3.msra.mxu1 %v4852_v63  ;;  %5276 = vmatmul.mubr.msk.f32.vlgmr.msra.gmra.mxu0 %vm424_vm2, %v1225_v49  ;;  %v6090_v49 = vld [vmem:[%s6350_s4 + $0x5] ss:$0 sm:$0xff] }
 0x2e4   :  { %5283 = vmatprep.subr.mxu0 %v4841_v31  ;;  %5304 = vmatmul.mubr.msk.f32.vlgmr.msra.gmra.mxu1 %vm62_vm0, %v5715_v5 }
 0x2e5   :  { %5284 = vmatpush3.msra.mxu0 %v4841_v31  ;;  %5287 = vmatprep.mubr.msk.f32.mxu0 %vm62_vm0, %v5707_v3 }
 0x2e6   :  { %5285 = vmatprep.subr.mxu0 %v4840_v1  ;;  %5306 = vmatprep.mubr.msk.f32.mxu1 %vm62_vm0, %v5722_v6 }
 0x2e7   :  { %5286 = vmatpush3.msra.mxu0 %v4840_v1  ;;  %5331 = vmatprep.subr.mxu1 %v5627_v13 }
 0x2e8   :  { %5288 = vmatmul.mubr.msk.f32.vlgmr.msra.gmra.mxu0 %vm62_vm0, %v5715_v5  ;;  %5307 = vmatmul.mubr.msk.f32.gmra.mxu1 %vm62_vm0, %v5733_v7 }
 0x2e9   :  { %5290 = vmatprep.mubr.msk.f32.mxu0 %vm62_vm0, %v5722_v6  ;;  %5309 = vmatprep.mubr.msk.f32.mxu1 %vm62_vm0, %v5740_v8 }
 0x2ea   :  { %5315 = vmatprep.subr.mxu0 %v4865_v2 }
 0x2eb   :  { %5316 = vmatpush3.msra.mxu0 %v4865_v2 }
 0x2ec   :  { %5291 = vmatmul.mubr.msk.f32.gmra.mxu0 %vm62_vm0, %v5733_v7  ;;  %5310 = vmatmul.mubr.msk.f32.gmra.mxu1 %vm62_vm0, %v5751_v9 }
 0x2ed   :  { %5293 = vmatprep.mubr.msk.f32.mxu0 %vm62_vm0, %v5740_v8  ;;  %5312 = vmatprep.mubr.msk.f32.mxu1 %vm62_vm0, %v5758_v10 }
 0x2ee   :  { %5317 = vmatprep.subr.mxu0 %v4864_v53 }
 0x2ef   :  { %5318 = vmatpush3.msra.mxu0 %v4864_v53 }
 0x2f0   :  { %5294 = vmatmul.mubr.msk.f32.gmra.mxu0 %vm62_vm0, %v5751_v9  ;;  %5313 = vmatmul.mubr.msk.f32.gmra.mxu1 %vm62_vm0, %v5769_v11 }
 0x2f1   :  { %5296 = vmatprep.mubr.msk.f32.mxu0 %vm62_vm0, %v5758_v10  ;;  %5333 = vmatprep.mubr.msk.f32.mxu1 %vm5628_vm1, %v5627_v13 }
 0x2f2   :  { %5351 = vmatprep.subr.mxu0 %v5627_v13 }
 0x2f4   :  { %5297 = vmatmul.mubr.msk.f32.gmra.mxu0 %vm62_vm0, %v5769_v11 }
 0x2f5   :  { %5319 = vmatprep.mubr.msk.f32.mxu0 %vm62_vm0, %v5707_v3 }
 0x2f8   :  { %5320 = vmatmul.mubr.msk.f32.vlgmr.msra.gmra.mxu0 %vm62_vm0, %v5715_v5 }
 0x2f9   :  { %5322 = vmatprep.mubr.msk.f32.mxu0 %vm62_vm0, %v5722_v6 }
 0x2fc   :  { %5323 = vmatmul.mubr.msk.f32.gmra.mxu0 %vm62_vm0, %v5733_v7 }
 0x2fd   :  { %5325 = vmatprep.mubr.msk.f32.mxu0 %vm62_vm0, %v5740_v8 }
 0x300   :  { %5326 = vmatmul.mubr.msk.f32.gmra.mxu0 %vm62_vm0, %v5751_v9 }
 0x301   :  { %5328 = vmatprep.mubr.msk.f32.mxu0 %vm62_vm0, %v5758_v10 }
 0x304   :  { %5329 = vmatmul.mubr.msk.f32.gmra.mxu0 %vm62_vm0, %v5769_v11 }
 0x305   :  { %5353 = vmatprep.mubr.msk.f32.mxu0 %vm5628_vm1, %v5627_v13 }
 0x38f   :  { %v6025_v3 = vpop.f32.mrf.mxu1 }
 0x391   :  { %v5252_v5 = vpop.f32.mrf.mxu1 }
 0x393   :  { %v6027_v6 = vpop.f32.mrf.mxu0 }
 0x395   :  { %v5247_v7 = vpop.f32.mrf.mxu0 }
 0x397   :  { %v6029_v4 = vpop.f32.mrf.mxu1 }
 0x399   :  { %v5262_v8 = vpop.f32.mrf.mxu1 }
 0x39b   :  { %v6031_v14 = vpop.f32.mrf.mxu0 }
 0x39c   :  { %v6033_v9 = vpop.f32.mrf.mxu1 }
 0x39d   :  { %v5257_v10 = vpop.f32.mrf.mxu0 }
 0x39e   :  { %v5272_v62 = vpop.f32.mrf.mxu1 }
 0x39f   :  { %v6035_v15 = vpop.f32.mrf.mxu0 }
 0x3a0   :  { %v6037_v11 = vpop.f32.mrf.mxu1 }
 0x3a1   :  { %v5267_v17 = vpop.f32.mrf.mxu0 }
 0x3a2   :  { %v5282_v18 = vpop.f32.mrf.mxu1 }
 0x3a3   :  { %v6039_v20 = vpop.f32.mrf.mxu0 }
 0x3a4   :  { %v5305_v22 = vpop.f32.mrf.mxu1 }
 0x3a5   :  { %v5277_v25 = vpop.f32.mrf.mxu0  ;;  %v2011_v36 = vadd.f32 %v5305_v22, %v4855_v23 }
 0x3a6   :  { %v2005_v26 = vpop.f32.mrf.mxu1 }
 0x3a7   :  { %v2006_v27 = vadd.f32 %v4855_v23, %v2005_v26 }
 0x3a8   :  { %v5289_v28 = vpop.f32.mrf.mxu0  ;;  %v5308_v30 = vpop.f32.mrf.mxu1 }
 0x3a9   :  { %5332 = vmatpush3.xpose.msk.msra.mxu1 %vm424_vm2, %v2006_v27  ;;  %v1895_v44 = vadd.f32 %v5289_v28, %v4843_v33  ;;  %v2021_v58 = vadd.f32 %v5308_v30, %v4855_v23 }
 0x3aa   :  { %v1889_v21 = vpop.f32.mrf.mxu0  ;;  %5336 = vmatprep.subr.mxu1 %v5627_v13  ;;  %v2015_v34 = vpop.f32.mrf.mxu1 }
 0x3ab   :  { %v1890_v35 = vadd.f32 %v4843_v33, %v1889_v21  ;;  %v2016_v40 = vadd.f32 %v4855_v23, %v2015_v34 }
 0x3ac   :  { %v5292_v37 = vpop.f32.mrf.mxu0  ;;  %v5311_v39 = vpop.f32.mrf.mxu1 }
 0x3ad   :  { %5334 = vmatmul.mubr.msk.f32.vlgmr.msra.gmra.mxu1 %vm424_vm2, %v1890_v35  ;;  %v1905_v59 = vadd.f32 %v5292_v37, %v4843_v33  ;;  %v2031_v0 = vadd.f32 %v5311_v39, %v4855_v23 }
 0x3ae   :  { %5337 = vmatpush3.xpose.msk.msra.mxu1 %vm424_vm2, %v2011_v36  ;;  %5338 = vmatprep.mubr.msk.f32.mxu1 %vm5628_vm1, %v5627_v13  ;;  %v1899_v42 = vpop.f32.mrf.mxu0  ;;  %v2025_v43 = vpop.f32.mrf.mxu1 }
 0x3af   :  { %5341 = vmatprep.subr.mxu1 %v5627_v13  ;;  %v2026_v45 = vadd.f32 %v4855_v23, %v2025_v43  ;;  %v1900_v55 = vadd.f32 %v4843_v33, %v1899_v42 }
 0x3b0   :  { %v5295_v47 = vpop.f32.mrf.mxu0  ;;  %v5314_v48 = vpop.f32.mrf.mxu1 }
 0x3b1   :  { %5339 = vmatmul.mubr.msk.f32.vlgmr.msra.gmra.mxu1 %vm424_vm2, %v1895_v44  ;;  %5352 = vmatpush3.xpose.msk.msra.mxu0 %vm424_vm2, %v2026_v45  ;;  %v1915_v61 = vadd.f32 %v5295_v47, %v4843_v33  ;;  %v2041_v63 = vadd.f32 %v5314_v48, %v4855_v23 }
 0x3b2   :  { %5342 = vmatpush3.xpose.msk.msra.mxu1 %vm424_vm2, %v2016_v40  ;;  %5343 = vmatprep.mubr.msk.f32.mxu1 %vm5628_vm1, %v5627_v13  ;;  %v1909_v50 = vpop.f32.mrf.mxu0  ;;  %v2035_v51 = vpop.f32.mrf.mxu1 }
 0x3b3   :  { %5346 = vmatprep.subr.mxu1 %v5627_v13  ;;  %v1910_v52 = vadd.f32 %v4843_v33, %v1909_v50  ;;  %v2036_v56 = vadd.f32 %v4855_v23, %v2035_v51  ;;  %5361 = vmatprep.subr.mxu0 %v5627_v13 }
 0x3b4   :  { %v5298_v57 = vpop.f32.mrf.mxu0 }
 0x3b5   :  { %5344 = vmatmul.mubr.msk.f32.vlgmr.msra.gmra.mxu1 %vm424_vm2, %v1900_v55  ;;  %5354 = vmatmul.mubr.msk.f32.vlgmr.msra.gmra.mxu0 %vm424_vm2, %v1910_v52  ;;  %v1925_v38 = vadd.f32 %v5298_v57, %v4843_v33 }
 0x3b6   :  { %5347 = vmatpush3.xpose.msk.msra.mxu1 %vm424_vm2, %v2021_v58  ;;  %5348 = vmatprep.mubr.msk.f32.mxu1 %vm5628_vm1, %v5627_v13  ;;  %v1919_v32 = vpop.f32.mrf.mxu0 }
 0x3b7   :  { %5356 = vmatprep.subr.mxu1 %v5627_v13  ;;  %v1920_v60 = vadd.f32 %v4843_v33, %v1919_v32  ;;  %5362 = vmatpush3.xpose.msk.msra.mxu0 %vm424_vm2, %v2036_v56 }
 0x3b8   :  { %5363 = vmatprep.mubr.msk.f32.mxu0 %vm5628_vm1, %v5627_v13  ;;  %5371 = vmatprep.subr.mxu0 %v5627_v13  ;;  %v5321_v31 = vpop.f32.mrf.mxu0 }
 0x3b9   :  { %5349 = vmatmul.mubr.msk.f32.vlgmr.msra.gmra.mxu1 %vm424_vm2, %v1905_v59  ;;  %v2127_v1 = vadd.f32 %v5321_v31, %v6090_v49 }
 0x3ba   :  { %5357 = vmatpush3.xpose.msk.msra.mxu1 %vm424_vm2, %v2031_v0  ;;  %5358 = vmatprep.mubr.msk.f32.mxu1 %vm5628_vm1, %v5627_v13  ;;  %v2121_v2 = vpop.f32.mrf.mxu0 }
 0x3bb   :  { %5364 = vmatmul.mubr.msk.f32.vlgmr.msra.gmra.mxu0 %vm424_vm2, %v1920_v60  ;;  %5366 = vmatprep.subr.mxu1 %v5627_v13  ;;  %v2122_v53 = vadd.f32 %v6090_v49, %v2121_v2 }
 0x3bc   :  { %5373 = vmatprep.mubr.msk.f32.mxu0 %vm5628_vm1, %v5627_v13  ;;  %v5324_v5 = vpop.f32.mrf.mxu0 }
 0x3bd   :  { %5359 = vmatmul.mubr.msk.f32.vlgmr.msra.gmra.mxu1 %vm424_vm2, %v1915_v61  ;;  %v6096_v7 = vadd.f32 %v5324_v5, %v6090_v49  ;;  %5372 = vmatpush3.msra.mxu0 %v2122_v53 }
 0x3be   :  { %5367 = vmatpush3.xpose.msk.msra.mxu1 %vm424_vm2, %v2041_v63  ;;  %5368 = vmatprep.mubr.msk.f32.mxu1 %vm5628_vm1, %v5627_v13  ;;  %v2131_v8 = vpop.f32.mrf.mxu0 }
 0x3bf   :  { %5376 = vmatprep.subr.mxu1 %v5627_v13  ;;  %5381 = vmatprep.subr.mxu0 %v5627_v13  ;;  %v6100_v10 = vadd.f32 %v6090_v49, %v2131_v8 }
 0x3c0   :  { %v5327_v62 = vpop.f32.mrf.mxu0 }
 0x3c1   :  { %5369 = vmatmul.mubr.msk.f32.vlgmr.msra.gmra.mxu1 %vm424_vm2, %v1925_v38  ;;  %v6103_v17 = vadd.f32 %v5327_v62, %v6090_v49 }
 0x3c2   :  { %5378 = vmatprep.mubr.msk.f32.mxu1 %vm5628_vm1, %v5627_v13  ;;  %5377 = vmatpush3.msra.mxu1 %v2127_v1  ;;  %v2141_v18 = vpop.f32.mrf.mxu0 }
 0x3c3   :  { %5386 = vmatprep.subr.mxu1 %v5627_v13  ;;  %v6106_v22 = vadd.f32 %v6090_v49, %v2141_v18 }
 0x3c4   :  { %v5330_v23 = vpop.f32.mrf.mxu0 }
 0x3c5   :  { %v6109_v25 = vadd.f32 %v5330_v23, %v6090_v49 }
 0x3c6   :  { %v6112_v21 = vpop.f32.mrf.mxu0 }
 0x46d   :  { %v2232_v26 = vpop.f32.mrf.mxu1 }
 0x46e   :  { %v2768_v27 = vmul.f32 0.35355338, %v2232_v26 }
 0x46f   :  { %v5335_v28 = vpop.f32.mrf.mxu1 }
 0x470   :  { %v2776_v30 = vadd.f32 %v2768_v27, %v5882_v29 }
 0x471   :  { %v2308_v33 = vpop.f32.mrf.mxu1 }
 0x472   :  { %v2769_v34 = vmul.f32 0.35355338, %v2308_v33  ;;  %v2784_v35 = vsel %vm424_vm2, %v2776_v30, -inf }
 0x473   :  { %2785 = vmax.xlane.f32.xlu0 %v2784_v35  ;;  %v5340_v36 = vpop.f32.mrf.mxu1 }
 0x474   :  { %v2777_v37 = vadd.f32 %v2769_v34, %v5880_v24 }
 0x475   :  { %v2384_v39 = vpop.f32.mrf.mxu1  ;;  %v2536_v40 = vpop.f32.mrf.mxu0 }
 0x476   :  { %v2770_v42 = vmul.f32 0.35355338, %v2384_v39  ;;  %v2787_v43 = vsel %vm424_vm2, %v2777_v37, -inf  ;;  %v2772_v44 = vmul.f32 0.35355338, %v2536_v40 }
 0x477   :  { %2788 = vmax.xlane.f32.xlu1 %v2787_v43  ;;  %v5345_v45 = vpop.f32.mrf.mxu1  ;;  %v5355_v47 = vpop.f32.mrf.mxu0 }
 0x478   :  { %v2778_v29 = vadd.f32 %v2770_v42, %v5891_v46  ;;  %v2780_v48 = vadd.f32 %v2772_v44, %v5899_v12 }
 0x479   :  { %v2460_v50 = vpop.f32.mrf.mxu1 }
 0x47a   :  { %v2771_v51 = vmul.f32 0.35355338, %v2460_v50  ;;  %v2790_v55 = vsel %vm424_vm2, %v2778_v29, -inf  ;;  %v2796_v58 = vsel %vm424_vm2, %v2780_v48, -inf }
 0x47b   :  { %2791 = vmax.xlane.f32.xlu0 %v2790_v55  ;;  %v5350_v52 = vpop.f32.mrf.mxu1  ;;  %v2688_v24 = vpop.f32.mrf.mxu0 }
 0x47c   :  { %v2774_v56 = vmul.f32 0.35355338, %v2688_v24  ;;  %v2779_v57 = vadd.f32 %v2771_v51, %v5889_v41 }
 0x47d   :  { %v2612_v32 = vpop.f32.mrf.mxu1  ;;  %v5365_v59 = vpop.f32.mrf.mxu0 }
 0x47e   :  { %v2773_v60 = vmul.f32 0.35355338, %v2612_v32  ;;  %v2793_v0 = vsel %vm424_vm2, %v2779_v57, -inf  ;;  %v2782_v46 = vadd.f32 %v2774_v56, %v5905_v19 }
 0x47f   :  { %2797 = vmax.xlane.f32.xlu0 %v2796_v58  ;;  %2794 = vmax.xlane.f32.xlu1 %v2793_v0  ;;  %v5360_v12 = vpop.f32.mrf.mxu1 }
 0x480   :  { %v2802_v61 = vsel %vm424_vm2, %v2782_v46, -inf  ;;  %v2781_v63 = vadd.f32 %v2773_v60, %v5895_v54 }
 0x481   :  { %v2764_v38 = vpop.f32.mrf.mxu1 }
 0x482   :  { %v2775_v31 = vmul.f32 0.35355338, %v2764_v38  ;;  %v2799_v1 = vsel %vm424_vm2, %v2781_v63, -inf }
 0x483   :  { %2803 = vmax.xlane.f32.xlu0 %v2802_v61  ;;  %2800 = vmax.xlane.f32.xlu1 %v2799_v1  ;;  %v5370_v41 = vpop.f32.mrf.mxu1 }
 0x484   :  { %v2783_v2 = vadd.f32 %v2775_v31, %v5902_v16 }
 0x486   :  { %v2805_v53 = vsel %vm424_vm2, %v2783_v2, -inf }
 0x487   :  { %2806 = vmax.xlane.f32.xlu1 %v2805_v53 }
 0x4fc   :  { %v2786_v19 = vpop.xlane.xlu0 %2785 }
 0x4fd   :  { %v2808_v5 = vsub.f32 %v2776_v30, %v2786_v19 }
 0x4ff   :  { %v2816_v8 = vmul.f32 1.442695, %v2808_v5 }
 0x500   :  { %v2789_v62 = vpop.xlane.xlu1 %2788 }
 0x501   :  { %5571 = vpow2.f32 %v2816_v8  ;;  %v2809_v18 = vsub.f32 %v2777_v37, %v2789_v62 }
 0x503   :  { %v2818_v23 = vmul.f32 1.442695, %v2809_v18 }
 0x504   :  { %v2792_v54 = vpop.xlane.xlu0 %2791 }
 0x505   :  { %5573 = vpow2.f32 %v2818_v23  ;;  %v2810_v26 = vsub.f32 %v2778_v29, %v2792_v54 }
 0x507   :  { %v2820_v27 = vmul.f32 1.442695, %v2810_v26 }
 0x508   :  { %v2798_v28 = vpop.xlane.xlu0 %2797  ;;  %v2795_v33 = vpop.xlane.xlu1 %2794 }
 0x509   :  { %5575 = vpow2.f32 %v2820_v27  ;;  %v2812_v34 = vsub.f32 %v2780_v48, %v2798_v28  ;;  %v2811_v35 = vsub.f32 %v2779_v57, %v2795_v33 }
 0x50b   :  { %v2824_v16 = vmul.f32 1.442695, %v2812_v34  ;;  %v2822_v36 = vmul.f32 1.442695, %v2811_v35 }
 0x50c   :  { %v2804_v39 = vpop.xlane.xlu0 %2803  ;;  %v2801_v40 = vpop.xlane.xlu1 %2800 }
 0x50d   :  { %5577 = vpow2.f32 %v2824_v16  ;;  %v2814_v30 = vsub.f32 %v2782_v46, %v2804_v39  ;;  %v2813_v42 = vsub.f32 %v2781_v63, %v2801_v40 }
 0x50e   :  { %v5572_v43 = vpop.eup %5571  ;;  %5579 = vpow2.f32 %v2822_v36 }
 0x50f   :  { %v2828_v37 = vmul.f32 1.442695, %v2814_v30  ;;  %v2826_v44 = vmul.f32 1.442695, %v2813_v42  ;;  %v2832_v45 = vsel %vm424_vm2, %v5572_v43, 0.0 }
 0x510   :  { %2833 = vadd.xlane.f32.xlu0 %v2832_v45  ;;  %v2807_v47 = vpop.xlane.xlu1 %2806  ;;  %v4926_v45 = vld [vmem:[%s6353_s7 + $0x18] sm:$0xff] }
 0x511   :  { %5581 = vpow2.f32 %v2828_v37  ;;  %v2815_v29 = vsub.f32 %v2783_v2, %v2807_v47  ;;  %v3732_v37 = vld [vmem:[%s6353_s7 + $0x8] sm:$0xff]  ;;  %v4925_v47 = vld [vmem:[%s6353_s7 + $0x10] sm:$0xff] }
 0x512   :  { %v5574_v50 = vpop.eup %5573  ;;  %5583 = vpow2.f32 %v2826_v44  ;;  %v3731_v44 = vld [vmem:[%s6353_s7] sm:$0xff] }
 0x513   :  { %v2830_v48 = vmul.f32 1.442695, %v2815_v29  ;;  %v2835_v51 = vsel %vm424_vm2, %v5574_v50, 0.0  ;;  %v4932_v29 = vld [vmem:[%s6353_s7 + $0x28] sm:$0xff] }
 0x514   :  { %2836 = vadd.xlane.f32.xlu1 %v2835_v51 }
 0x515   :  { %5585 = vpow2.f32 %v2830_v48 }
 0x516   :  { %v5576_v55 = vpop.eup %5575 }
 0x517   :  { %v2838_v52 = vsel %vm424_vm2, %v5576_v55, 0.0 }
 0x518   :  { %2839 = vadd.xlane.f32.xlu0 %v2838_v52 }
 0x51a   :  { %v5578_v24 = vpop.eup %5577 }
 0x51b   :  { %v5580_v56 = vpop.eup %5579  ;;  %v2844_v58 = vsel %vm424_vm2, %v5578_v24, 0.0 }
 0x51c   :  { %2845 = vadd.xlane.f32.xlu0 %v2844_v58  ;;  %v2841_v57 = vsel %vm424_vm2, %v5580_v56, 0.0  ;;  %v4917_v58 = vld [vmem:[%s6354_s6] ss:$0 sm:$0xff] }
 0x51d   :  { %2842 = vadd.xlane.f32.xlu1 %v2841_v57 }
 0x51e   :  { %v5582_v32 = vpop.eup %5581 }
 0x51f   :  { %v5584_v59 = vpop.eup %5583  ;;  %v2850_v60 = vsel %vm424_vm2, %v5582_v32, 0.0 }
 0x520   :  { %2851 = vadd.xlane.f32.xlu0 %v2850_v60  ;;  %v2847_v0 = vsel %vm424_vm2, %v5584_v59, 0.0 }
 0x521   :  { %2848 = vadd.xlane.f32.xlu1 %v2847_v0 }
 0x522   :  { %v5586_v46 = vpop.eup %5585 }
 0x523   :  { %v2853_v12 = vsel %vm424_vm2, %v5586_v46, 0.0 }
 0x525   :  { %2854 = vadd.xlane.f32.xlu1 %v2853_v12 }
 0x599   :  { %v2834_v61 = vpop.xlane.xlu0 %2833 }
 0x59a   :  { %5587 = vrcp.f32 %v2834_v61 }
 0x59d   :  { %v2837_v63 = vpop.xlane.xlu1 %2836 }
 0x59e   :  { %5589 = vrcp.f32 %v2837_v63 }
 0x5a1   :  { %v2840_v38 = vpop.xlane.xlu0 %2839 }
 0x5a2   :  { %5591 = vrcp.f32 %v2840_v38 }
 0x5a5   :  { %v2846_v31 = vpop.xlane.xlu0 %2845 }
 0x5a6   :  { %5593 = vrcp.f32 %v2846_v31  ;;  %v2843_v1 = vpop.xlane.xlu1 %2842 }
 0x5a7   :  { %v5588_v41 = vpop.eup %5587  ;;  %5595 = vrcp.f32 %v2843_v1 }
 0x5a8   :  { %v2864_v2 = vmul.f32 %v5588_v41, %v5572_v43 }
 0x5a9   :  { %v2852_v53 = vpop.xlane.xlu0 %2851 }
 0x5aa   :  { %5597 = vrcp.f32 %v2852_v53  ;;  %v2849_v19 = vpop.xlane.xlu1 %2848  ;;  %5374 = vmatmul.mubr.msk.f32.vlgmr.msra.gmra.mxu0 %vm424_vm2, %v2864_v2 }
 0x5ab   :  { %v5590_v5 = vpop.eup %5589  ;;  %5599 = vrcp.f32 %v2849_v19  ;;  %5382 = vmatpush3.msra.mxu0 %v6100_v10  ;;  %5383 = vmatprep.mubr.msk.f32.mxu0 %vm5628_vm1, %v5627_v13 }
 0x5ac   :  { %v2865_v8 = vmul.f32 %v5590_v5, %v5574_v50  ;;  %5391 = vmatprep.subr.mxu0 %v5627_v13 }
 0x5ae   :  { %v2855_v62 = vpop.xlane.xlu1 %2854  ;;  %5379 = vmatmul.mubr.msk.f32.vlgmr.msra.gmra.mxu1 %vm424_vm2, %v2865_v8 }
 0x5af   :  { %v5592_v18 = vpop.eup %5591  ;;  %5601 = vrcp.f32 %v2855_v62  ;;  %5387 = vmatpush3.msra.mxu1 %v6096_v7  ;;  %5388 = vmatprep.mubr.msk.f32.mxu1 %vm5628_vm1, %v5627_v13  ;;  %v2152_v7 = vadd.f32 %v6090_v49, %v6112_v21  ;;  %v1811_v21 = vld [vmem:[%s6352_s5] sm:$0xff] }
 0x5b0   :  { %v2866_v23 = vmul.f32 %v5592_v18, %v5576_v55  ;;  %5396 = vmatprep.subr.mxu1 %v5627_v13 }
 0x5b2   :  { %5384 = vmatmul.mubr.msk.f32.vlgmr.msra.gmra.mxu0 %vm424_vm2, %v2866_v23 }
 0x5b3   :  { %v5594_v10 = vpop.eup %5593  ;;  %5392 = vmatpush3.msra.mxu0 %v6106_v22  ;;  %5393 = vmatprep.mubr.msk.f32.mxu0 %vm5628_vm1, %v5627_v13 }
 0x5b4   :  { %v5596_v54 = vpop.eup %5595  ;;  %5401 = vmatprep.subr.mxu0 %v5627_v13  ;;  %v2868_v26 = vmul.f32 %v5594_v10, %v5578_v24 }
 0x5b5   :  { %v2867_v27 = vmul.f32 %v5596_v54, %v5580_v56 }
 0x5b6   :  { %5394 = vmatmul.mubr.msk.f32.vlgmr.msra.gmra.mxu0 %vm424_vm2, %v2868_v26 }
 0x5b7   :  { %v5598_v28 = vpop.eup %5597  ;;  %5389 = vmatmul.mubr.msk.f32.vlgmr.msra.gmra.mxu1 %vm424_vm2, %v2867_v27  ;;  %5402 = vmatpush3.msra.mxu0 %v2152_v7  ;;  %v4931_v7 = vld [vmem:[%s6353_s7 + $0x20] sm:$0xff] }
 0x5b8   :  { %v5600_v33 = vpop.eup %5599  ;;  %5397 = vmatpush3.msra.mxu1 %v6103_v17  ;;  %5398 = vmatprep.mubr.msk.f32.mxu1 %vm5628_vm1, %v5627_v13  ;;  %v2870_v22 = vmul.f32 %v5598_v28, %v5582_v32 }
 0x5b9   :  { %5403 = vmatprep.mubr.msk.f32.mxu0 %vm5628_vm1, %v5627_v13  ;;  %5406 = vmatprep.subr.mxu1 %v5627_v13  ;;  %v2869_v49 = vmul.f32 %v5600_v33, %v5584_v59 }
 0x5ba   :  { %5404 = vmatmul.mubr.msk.f32.vlgmr.msra.gmra.mxu0 %vm424_vm2, %v2870_v22 }
 0x5bb   :  { %5399 = vmatmul.mubr.msk.f32.vlgmr.msra.gmra.mxu1 %vm424_vm2, %v2869_v49  ;;  %v4928_v49 = vld [vmem:[%s6355_s8 + $0x1] ss:$0 sm:$0xff] }
 0x5bc   :  { %v5602_v34 = vpop.eup %5601  ;;  %5407 = vmatpush3.msra.mxu1 %v6109_v25  ;;  %5408 = vmatprep.mubr.msk.f32.mxu1 %vm5628_vm1, %v5627_v13 }
 0x5bd   :  { %v2871_v17 = vmul.f32 %v5602_v34, %v5586_v46  ;;  %5425 = vmatprep.subr.mxu1 %v1811_v21 }
 0x5bf   :  { %5409 = vmatmul.mubr.msk.f32.vlgmr.msra.gmra.mxu1 %vm424_vm2, %v2871_v17 }
 0x5c0   :  { %5427 = vmatprep.mubr.msk.f32.mxu1 %vm424_vm2, %v6027_v6  ;;  %5426 = vmatpush3.msra.mxu1 %v1811_v21 }
 0x5c1   :  { %5452 = vmatprep.subr.mxu1 %v4926_v45 }
 0x5c3   :  { %5428 = vmatmul.mubr.msk.f32.vlgmr.msra.gmra.mxu1 %vm424_vm2, %v6025_v3  ;;  %v4900_v3 = vld [vmem:[%s6352_s5 + $0x8] sm:$0xff] }
 0x5c4   :  { %5430 = vmatprep.mubr.msk.f32.mxu1 %vm424_vm2, %v6031_v14  ;;  %5411 = vmatprep.subr.mxu0 %v4900_v3 }
 0x5c5   :  { %5412 = vmatpush3.msra.mxu0 %v4900_v3  ;;  %5453 = vmatpush3.msra.mxu1 %v4926_v45 }
 0x5c6   :  { %5439 = vmatprep.subr.mxu0 %v3732_v37  ;;  %5454 = vmatprep.subr.mxu1 %v4925_v47 }
 0x5c7   :  { %5431 = vmatmul.mubr.msk.f32.gmra.mxu1 %vm424_vm2, %v6029_v4 }
 0x5c8   :  { %5433 = vmatprep.mubr.msk.f32.mxu1 %vm424_vm2, %v6035_v15  ;;  %5455 = vmatpush3.msra.mxu1 %v4925_v47 }
 0x5c9   :  { %5459 = vmatprep.subr.mxu1 %v4932_v29 }
 0x5cb   :  { %5434 = vmatmul.mubr.msk.f32.gmra.mxu1 %vm424_vm2, %v6033_v9 }
 0x5cc   :  { %5436 = vmatprep.mubr.msk.f32.mxu1 %vm424_vm2, %v6039_v20 }
 0x5cf   :  { %5437 = vmatmul.mubr.msk.f32.gmra.mxu1 %vm424_vm2, %v6037_v11 }
 0x66a   :  { %v2941_v6 = vpop.f32.mrf.mxu0 }
 0x66b   :  { %5413 = vmatprep.mubr.msk.f32.mxu0 %vm424_vm2, %v2941_v6 }
 0x66c   :  { %v5375_v4 = vpop.f32.mrf.mxu0 }
 0x66d   :  { %v4934_v4 = vld [vmem:[%s6355_s8 + $0x2] ss:$0 sm:$0xff] }
 0x66e   :  { %v3014_v14 = vpop.f32.mrf.mxu1 }
 0x66f   :  { %5414 = vmatmul.mubr.msk.f32.vlgmr.msra.gmra.mxu0 %vm424_vm2, %v3014_v14  ;;  %v4918_v14 = vld [vmem:[%s6355_s8] ss:$0 sm:$0xff] }
 0x670   :  { %v5380_v9 = vpop.f32.mrf.mxu1  ;;  %5440 = vmatpush3.msra.mxu0 %v3732_v37 }
 0x671   :  { %5441 = vmatprep.subr.mxu0 %v3731_v44 }
 0x672   :  { %v3087_v15 = vpop.f32.mrf.mxu0  ;;  %5442 = vmatpush3.msra.mxu0 %v3731_v44 }
 0x673   :  { %5416 = vmatprep.mubr.msk.f32.mxu0 %vm424_vm2, %v3087_v15  ;;  %5477 = vmatprep.subr.mxu0 %v5627_v13 }
 0x674   :  { %v5385_v20 = vpop.f32.mrf.mxu0 }
 0x676   :  { %v3233_v25 = vpop.f32.mrf.mxu0 }
 0x677   :  { %v3160_v11 = vpop.f32.mrf.mxu1 }
 0x678   :  { %5417 = vmatmul.mubr.msk.f32.gmra.mxu0 %vm424_vm2, %v3160_v11  ;;  %v5395_v35 = vpop.f32.mrf.mxu0 }
 0x679   :  { %v5390_v16 = vpop.f32.mrf.mxu1  ;;  %5419 = vmatprep.mubr.msk.f32.mxu0 %vm424_vm2, %v3233_v25 }
 0x67a   :  { %v3379_v36 = vpop.f32.mrf.mxu0 }
 0x67b   :  { %v3306_v39 = vpop.f32.mrf.mxu1 }
 0x67c   :  { %5420 = vmatmul.mubr.msk.f32.gmra.mxu0 %vm424_vm2, %v3306_v39  ;;  %v5405_v40 = vpop.f32.mrf.mxu0 }
 0x67d   :  { %v5400_v30 = vpop.f32.mrf.mxu1  ;;  %5422 = vmatprep.mubr.msk.f32.mxu0 %vm424_vm2, %v3379_v36 }
 0x67f   :  { %v3452_v42 = vpop.f32.mrf.mxu1 }
 0x680   :  { %5423 = vmatmul.mubr.msk.f32.gmra.mxu0 %vm424_vm2, %v3452_v42 }
 0x681   :  { %v5410_v43 = vpop.f32.mrf.mxu1 }
 0x683   :  { %v5429_v50 = vpop.f32.mrf.mxu1 }
 0x685   :  { %v3677_v48 = vpop.f32.mrf.mxu1 }
 0x687   :  { %v5432_v51 = vpop.f32.mrf.mxu1 }
 0x689   :  { %v3687_v56 = vpop.f32.mrf.mxu1 }
 0x68b   :  { %v5435_v60 = vpop.f32.mrf.mxu1 }
 0x68d   :  { %v3697_v12 = vpop.f32.mrf.mxu1 }
 0x68f   :  { %v5438_v41 = vpop.f32.mrf.mxu1 }
 0x691   :  { %v3707_v18 = vpop.f32.mrf.mxu1 }
 0x72f   :  { %v5415_v55 = vpop.f32.mrf.mxu0 }
 0x730   :  { %v3683_v52 = vadd.f32 %v5429_v50, %v5415_v55 }
 0x731   :  { %v3548_v24 = vpop.f32.mrf.mxu0 }
 0x732   :  { %v3678_v57 = vadd.f32 %v3677_v48, %v3548_v24  ;;  %v3724_v59 = vadd.f32 %v4917_v58, %v3683_v52 }
 0x734   :  { %v3723_v32 = vadd.f32 %v4917_v58, %v3678_v57 }
 0x736   :  { %5443 = vmatprep.mubr.msk.f32.mxu0 %vm62_vm0, %v3723_v32 }
 0x737   :  { %5444 = vmatmul.mubr.msk.f32.vlgmr.msra.gmra.mxu0 %vm62_vm0, %v3724_v59 }
 0x738   :  { %v5418_v0 = vpop.f32.mrf.mxu0 }
 0x739   :  { %v3693_v46 = vadd.f32 %v5432_v51, %v5418_v0 }
 0x73a   :  { %v3558_v61 = vpop.f32.mrf.mxu0 }
 0x73b   :  { %v6219_v63 = vadd.f32 %v4917_v58, %v3693_v46  ;;  %v3688_v38 = vadd.f32 %v3687_v56, %v3558_v61 }
 0x73c   :  { %v5421_v31 = vpop.f32.mrf.mxu0 }
 0x73d   :  { %v3725_v1 = vadd.f32 %v4917_v58, %v3688_v38  ;;  %5456 = vmatprep.mubr.msk.f32.mxu1 %vm62_vm0, %v6219_v63  ;;  %v3703_v2 = vadd.f32 %v5435_v60, %v5421_v31  ;;  %v51_v60 = vld [vmem:[%s6356_s2 + $0x8] sm:$0xff] }
 0x73e   :  { %v3568_v53 = vpop.f32.mrf.mxu0 }
 0x73f   :  { %v3698_v19 = vadd.f32 %v3697_v12, %v3568_v53  ;;  %5446 = vmatprep.mubr.msk.f32.mxu0 %vm62_vm0, %v3725_v1  ;;  %v3728_v23 = vadd.f32 %v4917_v58, %v3703_v2  ;;  %v52_v53 = vld [vmem:[%s6356_s2 + $0x10] sm:$0xff] }
 0x740   :  { %v5424_v5 = vpop.f32.mrf.mxu0 }
 0x741   :  { %v3727_v8 = vadd.f32 %v4917_v58, %v3698_v19  ;;  %v3713_v62 = vadd.f32 %v5438_v41, %v5424_v5 }
 0x742   :  { %v3578_v10 = vpop.f32.mrf.mxu0 }
 0x743   :  { %v6224_v54 = vadd.f32 %v4917_v58, %v3713_v62  ;;  %v3708_v26 = vadd.f32 %v3707_v18, %v3578_v10  ;;  %5447 = vmatmul.mubr.msk.f32.gmra.mxu0 %vm62_vm0, %v3727_v8 }
 0x744   :  { %5449 = vmatprep.mubr.msk.f32.mxu0 %vm62_vm0, %v3728_v23 }
 0x745   :  { %v3729_v27 = vadd.f32 %v4917_v58, %v3708_v26  ;;  %5457 = vmatmul.mubr.msk.f32.vlgmr.msra.gmra.mxu1 %vm62_vm0, %v6224_v54 }
 0x746   :  { %5460 = vmatpush3.msra.mxu1 %v4932_v29  ;;  %5463 = vmatprep.mubr.msk.f32.mxu1 %vm62_vm0, %v6219_v63  ;;  %v50_v29 = vld [vmem:[%s6356_s2] sm:$0xff] }
 0x747   :  { %5450 = vmatmul.mubr.msk.f32.gmra.mxu0 %vm62_vm0, %v3729_v27  ;;  %5461 = vmatprep.subr.mxu1 %v4931_v7 }
 0x748   :  { %5462 = vmatpush3.msra.mxu1 %v4931_v7  ;;  %5479 = vmatprep.mubr.msk.f32.mxu0 %vm5628_vm1, %v5627_v13 }
 0x749   :  { %5464 = vmatmul.mubr.msk.f32.vlgmr.msra.gmra.mxu1 %vm62_vm0, %v6224_v54  ;;  %5466 = vmatprep.subr.mxu1 %v5627_v13 }
 0x74a   :  { %5468 = vmatprep.mubr.msk.f32.mxu1 %vm5628_vm1, %v5627_v13 }
 0x7f7   :  { %v5445_v28 = vpop.f32.mrf.mxu0 }
 0x7f8   :  { %v3830_v40 = vadd.f32 %v5445_v28, %v4918_v14 }
 0x7f9   :  { %v3824_v33 = vpop.f32.mrf.mxu0 }
 0x7fa   :  { %v3825_v35 = vadd.f32 %v4918_v14, %v3824_v33 }
 0x803   :  { %v5448_v22 = vpop.f32.mrf.mxu0 }
 0x804   :  { %v3840_v15 = vadd.f32 %v5448_v22, %v4918_v14 }
 0x805   :  { %v3834_v21 = vpop.f32.mrf.mxu0  ;;  %v5458_v34 = vpop.f32.mrf.mxu1 }
 0x806   :  { %v3942_v17 = vadd.f32 %v5458_v34, %v4928_v49  ;;  %v3835_v42 = vadd.f32 %v4918_v14, %v3834_v21 }
 0x807   :  { %v5451_v3 = vpop.f32.mrf.mxu0  ;;  %v3936_v6 = vpop.f32.mrf.mxu1 }
 0x808   :  { %v3937_v9 = vadd.f32 %v4928_v49, %v3936_v6  ;;  %5478 = vmatpush3.xpose.msk.msra.mxu0 %vm62_vm0, %v3942_v17  ;;  %v3850_v30 = vadd.f32 %v5451_v3, %v4918_v14 }
 0x809   :  { %v5465_v20 = vpop.f32.mrf.mxu1  ;;  %5499 = vmatprep.subr.mxu0 %v5627_v13  ;;  %v3844_v25 = vpop.f32.mrf.mxu0 }
 0x80a   :  { %v4028_v11 = vadd.f32 %v5465_v20, %v4934_v4  ;;  %5467 = vmatpush3.xpose.msk.msra.mxu1 %vm62_vm0, %v3937_v9  ;;  %v3845_v39 = vadd.f32 %v4918_v14, %v3844_v25 }
 0x80b   :  { %v4022_v16 = vpop.f32.mrf.mxu1  ;;  %5480 = vmatmul.mubr.msk.f32.vlgmr.msra.gmra.mxu0 %vm62_vm0, %v3840_v15  ;;  %5488 = vmatprep.subr.mxu1 %v5627_v13 }
 0x80c   :  { %v4023_v36 = vadd.f32 %v4934_v4, %v4022_v16  ;;  %5500 = vmatpush3.msra.mxu0 %v4028_v11  ;;  %5482 = vmatprep.mubr.msk.f32.mxu0 %vm5628_vm1, %v5627_v13 }
 0x80d   :  { %5469 = vmatmul.mubr.msk.f32.vlgmr.msra.gmra.mxu1 %vm62_vm0, %v3825_v35 }
 0x80e   :  { %5489 = vmatpush3.msra.mxu1 %v4023_v36  ;;  %5471 = vmatprep.mubr.msk.f32.mxu1 %vm5628_vm1, %v5627_v13 }
 0x80f   :  { %5483 = vmatmul.mubr.msk.f32.gmra.mxu0 %vm62_vm0, %v3845_v39 }
 0x810   :  { %5485 = vmatprep.mubr.msk.f32.mxu0 %vm5628_vm1, %v5627_v13 }
 0x811   :  { %5472 = vmatmul.mubr.msk.f32.gmra.mxu1 %vm62_vm0, %v3830_v40 }
 0x812   :  { %5474 = vmatprep.mubr.msk.f32.mxu1 %vm5628_vm1, %v5627_v13 }
 0x813   :  { %5486 = vmatmul.mubr.msk.f32.gmra.mxu0 %vm62_vm0, %v3850_v30 }
 0x814   :  { %5501 = vmatprep.mubr.msk.f32.mxu0 %vm5628_vm1, %v5627_v13 }
 0x815   :  { %5475 = vmatmul.mubr.msk.f32.gmra.mxu1 %vm62_vm0, %v3835_v42 }
 0x816   :  { %5490 = vmatprep.mubr.msk.f32.mxu1 %vm5628_vm1, %v5627_v13 }
 0x8cb   :  { %v4201_v43 = vpop.f32.mrf.mxu0 }
 0x8cc   :  { %v4218_v37 = vmul.f32 0.25, %v4201_v43 }
 0x8cd   :  { %v4109_v44 = vpop.f32.mrf.mxu1  ;;  %v5481_v45 = vpop.f32.mrf.mxu0 }
 0x8ce   :  { %v4215_v47 = vmul.f32 0.25, %v4109_v44  ;;  %v4224_v24 = vadd.f32 %v4218_v37, %v50_v29 }
 0x8cf   :  { %v5470_v50 = vpop.f32.mrf.mxu1  ;;  %v4206_v48 = vpop.f32.mrf.mxu0 }
 0x8d0   :  { %v4221_v51 = vadd.f32 %v4215_v47, %v50_v29  ;;  %v4219_v56 = vmul.f32 0.25, %v4206_v48  ;;  %v4236_v61 = vsel %vm424_vm2, %v4224_v24, -inf }
 0x8d1   :  { %v4114_v55 = vpop.f32.mrf.mxu1  ;;  %v5484_v52 = vpop.f32.mrf.mxu0 }
 0x8d2   :  { %v4216_v58 = vmul.f32 0.25, %v4114_v55  ;;  %v4227_v57 = vsel %vm424_vm2, %v4221_v51, -inf  ;;  %v4225_v41 = vadd.f32 %v4219_v56, %v51_v60 }
 0x8d3   :  { %v4211_v32 = vpop.f32.mrf.mxu0  ;;  %4228 = vmax.xlane.f32.xlu0 %v4227_v57  ;;  %v5473_v59 = vpop.f32.mrf.mxu1 }
 0x8d4   :  { %v4222_v0 = vadd.f32 %v4216_v58, %v51_v60  ;;  %v4220_v38 = vmul.f32 0.25, %v4211_v32  ;;  %v4239_v5 = vsel %vm424_vm2, %v4225_v41, -inf }
 0x8d5   :  { %v4119_v46 = vpop.f32.mrf.mxu1  ;;  %v5487_v12 = vpop.f32.mrf.mxu0 }
 0x8d6   :  { %v4217_v31 = vmul.f32 0.25, %v4119_v46  ;;  %v4230_v1 = vsel %vm424_vm2, %v4222_v0, -inf  ;;  %v4226_v62 = vadd.f32 %v4220_v38, %v52_v53  ;;  %v4952_v12 = vld [vmem:[%s6353_s7 + $0x38] sm:$0xff] }
 0x8d7   :  { %4237 = vmax.xlane.f32.xlu0 %v4236_v61  ;;  %4231 = vmax.xlane.f32.xlu1 %v4230_v1  ;;  %v5476_v2 = vpop.f32.mrf.mxu1  ;;  %v4951_v61 = vld [vmem:[%s6353_s7 + $0x30] sm:$0xff] }
 0x8d8   :  { %v4223_v19 = vadd.f32 %v4217_v31, %v52_v53  ;;  %v4242_v18 = vsel %vm424_vm2, %v4226_v62, -inf  ;;  %5510 = vmatprep.subr.mxu1 %v4952_v12 }
 0x8da   :  { %v4233_v8 = vsel %vm424_vm2, %v4223_v19, -inf }
 0x8db   :  { %4240 = vmax.xlane.f32.xlu0 %v4239_v5  ;;  %4234 = vmax.xlane.f32.xlu1 %v4233_v8 }
 0x8df   :  { %4243 = vmax.xlane.f32.xlu1 %v4242_v18 }
 0x95c   :  { %v4229_v23 = vpop.xlane.xlu0 %4228 }
 0x95d   :  { %v4245_v10 = vsub.f32 %v4221_v51, %v4229_v23  ;;  %v4604_v23 = vld [vmem:[%s6357_s9 + $0x8] sm:$0xff] }
 0x95e   :  { %5523 = vmatprep.subr.mxu0 %v4604_v23 }
 0x95f   :  { %v4251_v26 = vmul.f32 1.442695, %v4245_v10  ;;  %v4603_v10 = vld [vmem:[%s6357_s9] sm:$0xff] }
 0x960   :  { %v4238_v7 = vpop.xlane.xlu0 %4237  ;;  %v4232_v27 = vpop.xlane.xlu1 %4231 }
 0x961   :  { %5603 = vpow2.f32 %v4251_v26  ;;  %v4248_v28 = vsub.f32 %v4224_v24, %v4238_v7  ;;  %v4246_v33 = vsub.f32 %v4222_v0, %v4232_v27  ;;  %v4954_v27 = vld [vmem:[%s6355_s8 + $0x3] ss:$0 sm:$0xff] }
 0x963   :  { %v4257_v22 = vmul.f32 1.442695, %v4248_v28  ;;  %v4253_v49 = vmul.f32 1.442695, %v4246_v33 }
 0x964   :  { %v4241_v21 = vpop.xlane.xlu0 %4240  ;;  %v4235_v34 = vpop.xlane.xlu1 %4234 }
 0x965   :  { %5605 = vpow2.f32 %v4257_v22  ;;  %v4249_v17 = vsub.f32 %v4225_v41, %v4241_v21  ;;  %v4247_v3 = vsub.f32 %v4223_v19, %v4235_v34 }
 0x966   :  { %5607 = vpow2.f32 %v4253_v49 }
 0x967   :  { %v4259_v6 = vmul.f32 1.442695, %v4249_v17  ;;  %v4255_v4 = vmul.f32 1.442695, %v4247_v3 }
 0x968   :  { %v4244_v14 = vpop.xlane.xlu1 %4243 }
 0x969   :  { %5609 = vpow2.f32 %v4259_v6  ;;  %v4250_v9 = vsub.f32 %v4226_v62, %v4244_v14 }
 0x96a   :  { %5611 = vpow2.f32 %v4255_v4 }
 0x96b   :  { %v4261_v15 = vmul.f32 1.442695, %v4250_v9 }
 0x96d   :  { %5613 = vpow2.f32 %v4261_v15 }
 0x96e   :  { %v5604_v20 = vpop.eup %5603 }
 0x96f   :  { %v4263_v25 = vsel %vm424_vm2, %v5604_v20, 0.0 }
 0x970   :  { %4264 = vadd.xlane.f32.xlu0 %v4263_v25 }
 0x972   :  { %v5606_v11 = vpop.eup %5605 }
 0x973   :  { %v5608_v35 = vpop.eup %5607  ;;  %v4272_v16 = vsel %vm424_vm2, %v5606_v11, 0.0 }
 0x974   :  { %4273 = vadd.xlane.f32.xlu0 %v4272_v16  ;;  %v4266_v36 = vsel %vm424_vm2, %v5608_v35, 0.0 }
 0x975   :  { %4267 = vadd.xlane.f32.xlu1 %v4266_v36  ;;  %v4695_v36 = vld [vmem:[%s6358_s11] sm:$0xff] }
 0x976   :  { %v5610_v39 = vpop.eup %5609 }
 0x977   :  { %v5612_v40 = vpop.eup %5611  ;;  %v4275_v30 = vsel %vm424_vm2, %v5610_v39, 0.0 }
 0x978   :  { %4276 = vadd.xlane.f32.xlu0 %v4275_v30  ;;  %v4269_v42 = vsel %vm424_vm2, %v5612_v40, 0.0 }
 0x979   :  { %4270 = vadd.xlane.f32.xlu1 %v4269_v42 }
 0x97a   :  { %v5614_v43 = vpop.eup %5613 }
 0x97b   :  { %v4278_v37 = vsel %vm424_vm2, %v5614_v43, 0.0 }
 0x97d   :  { %4279 = vadd.xlane.f32.xlu1 %v4278_v37 }
 0x9f9   :  { %v4265_v44 = vpop.xlane.xlu0 %4264 }
 0x9fa   :  { %5615 = vrcp.f32 %v4265_v44 }
 0x9fd   :  { %v4274_v45 = vpop.xlane.xlu0 %4273 }
 0x9fe   :  { %5617 = vrcp.f32 %v4274_v45  ;;  %v4268_v47 = vpop.xlane.xlu1 %4267 }
 0x9ff   :  { %5619 = vrcp.f32 %v4268_v47 }
 0xa01   :  { %v4277_v29 = vpop.xlane.xlu0 %4276 }
 0xa02   :  { %5621 = vrcp.f32 %v4277_v29  ;;  %v4271_v50 = vpop.xlane.xlu1 %4270 }
 0xa03   :  { %5623 = vrcp.f32 %v4271_v50 }
 0xa06   :  { %v4280_v48 = vpop.xlane.xlu1 %4279 }
 0xa07   :  { %v5616_v51 = vpop.eup %5615  ;;  %5625 = vrcp.f32 %v4280_v48 }
 0xa08   :  { %v4287_v55 = vmul.f32 %v5616_v51, %v5604_v20 }
 0xa0a   :  { %5491 = vmatmul.mubr.msk.f32.vlgmr.msra.gmra.mxu1 %vm424_vm2, %v4287_v55 }
 0xa0b   :  { %v5618_v52 = vpop.eup %5617  ;;  %5493 = vmatprep.mubr.msk.f32.mxu1 %vm5628_vm1, %v5627_v13  ;;  %5511 = vmatpush3.msra.mxu1 %v4952_v12 }
 0xa0c   :  { %v5620_v24 = vpop.eup %5619  ;;  %v4290_v56 = vmul.f32 %v5618_v52, %v5606_v11  ;;  %5512 = vmatprep.subr.mxu1 %v4951_v61 }
 0xa0d   :  { %v4288_v58 = vmul.f32 %v5620_v24, %v5608_v35  ;;  %5513 = vmatpush3.msra.mxu1 %v4951_v61 }
 0xa0e   :  { %5502 = vmatmul.mubr.msk.f32.vlgmr.msra.gmra.mxu0 %vm424_vm2, %v4290_v56 }
 0xa0f   :  { %v5622_v57 = vpop.eup %5621  ;;  %5494 = vmatmul.mubr.msk.f32.gmra.mxu1 %vm424_vm2, %v4288_v58  ;;  %5504 = vmatprep.mubr.msk.f32.mxu0 %vm5628_vm1, %v5627_v13 }
 0xa10   :  { %v5624_v32 = vpop.eup %5623  ;;  %5496 = vmatprep.mubr.msk.f32.mxu1 %vm5628_vm1, %v5627_v13  ;;  %v4291_v59 = vmul.f32 %v5622_v57, %v5610_v39  ;;  %5524 = vmatpush3.msra.mxu0 %v4604_v23 }
 0xa11   :  { %v4289_v60 = vmul.f32 %v5624_v32, %v5612_v40  ;;  %5525 = vmatprep.subr.mxu0 %v4603_v10 }
 0xa12   :  { %5505 = vmatmul.mubr.msk.f32.gmra.mxu0 %vm424_vm2, %v4291_v59 }
 0xa13   :  { %5497 = vmatmul.mubr.msk.f32.gmra.mxu1 %vm424_vm2, %v4289_v60  ;;  %5507 = vmatprep.mubr.msk.f32.mxu0 %vm5628_vm1, %v5627_v13 }
 0xa14   :  { %v5626_v0 = vpop.eup %5625  ;;  %5526 = vmatpush3.msra.mxu0 %v4603_v10 }
 0xa15   :  { %v4292_v46 = vmul.f32 %v5626_v0, %v5614_v43  ;;  %5530 = vmatprep.subr.mxu0 %v4695_v36 }
 0xa17   :  { %5508 = vmatmul.mubr.msk.f32.gmra.mxu0 %vm424_vm2, %v4292_v46 }
 0xaca   :  { %v4368_v38 = vpop.f32.mrf.mxu1 }
 0xacb   :  { %5514 = vmatprep.mubr.msk.f32.mxu1 %vm62_vm0, %v4368_v38 }
 0xacc   :  { %v5492_v13 = vpop.f32.mrf.mxu1 }
 0xace   :  { %v4457_v31 = vpop.f32.mrf.mxu0 }
 0xacf   :  { %v4373_v1 = vpop.f32.mrf.mxu1 }
 0xad0   :  { %5515 = vmatmul.mubr.msk.f32.vlgmr.msra.gmra.mxu1 %vm62_vm0, %v4373_v1  ;;  %v5503_v41 = vpop.f32.mrf.mxu0 }
 0xad1   :  { %v5495_v2 = vpop.f32.mrf.mxu1 }
 0xad2   :  { %v4462_v53 = vpop.f32.mrf.mxu0 }
 0xad3   :  { %v4378_v19 = vpop.f32.mrf.mxu1 }
 0xad4   :  { %5517 = vmatprep.mubr.msk.f32.mxu1 %vm62_vm0, %v4378_v19  ;;  %v5506_v5 = vpop.f32.mrf.mxu0 }
 0xad5   :  { %v5498_v8 = vpop.f32.mrf.mxu1  ;;  %5518 = vmatmul.mubr.msk.f32.gmra.mxu1 %vm62_vm0, %v4457_v31 }
 0xad6   :  { %5520 = vmatprep.mubr.msk.f32.mxu1 %vm62_vm0, %v4462_v53 }
 0xad7   :  { %v4467_v62 = vpop.f32.mrf.mxu0 }
 0xad9   :  { %v5509_v18 = vpop.f32.mrf.mxu0  ;;  %5521 = vmatmul.mubr.msk.f32.gmra.mxu1 %vm62_vm0, %v4467_v62 }
 0xb90   :  { %v5516_v26 = vpop.f32.mrf.mxu1 }
 0xb91   :  { %v4572_v22 = vadd.f32 %v5516_v26, %v4954_v27 }
 0xb92   :  { %v4566_v7 = vpop.f32.mrf.mxu1 }
 0xb93   :  { %v4567_v28 = vadd.f32 %v4954_v27, %v4566_v7 }
 0xb95   :  { %v5519_v33 = vpop.f32.mrf.mxu1  ;;  %v4595_v21 = vadd.f32 %v4572_v22, %v4567_v28 }
 0xb96   :  { %v4582_v4 = vadd.f32 %v5519_v33, %v4954_v27 }
 0xb97   :  { %v4576_v49 = vpop.f32.mrf.mxu1 }
 0xb98   :  { %v4577_v34 = vadd.f32 %v4954_v27, %v4576_v49 }
 0xb99   :  { %v5522_v17 = vpop.f32.mrf.mxu1 }
 0xb9a   :  { %v4597_v3 = vadd.f32 %v4595_v21, %v4577_v34  ;;  %v4592_v20 = vadd.f32 %v5522_v17, %v4954_v27 }
 0xb9b   :  { %v4586_v6 = vpop.f32.mrf.mxu1 }
 0xb9c   :  { %v4599_v14 = vmul.f32 0.33333334, %v4597_v3  ;;  %v4587_v9 = vadd.f32 %v4954_v27, %v4586_v6 }
 0xb9e   :  { %v4601_v15 = vadd.f32 %v4599_v14, %v6219_v63  ;;  %v4596_v25 = vadd.f32 %v4587_v9, %v4582_v4  ;;  %v4961_v63 = vld [vmem:[%s6359_s10] ss:$0 sm:$0xff] }
 0xba0   :  { %v4598_v11 = vadd.f32 %v4596_v25, %v4592_v20  ;;  %5527 = vmatprep.mubr.msk.f32.mxu0 %vm62_vm0, %v4601_v15 }
 0xba2   :  { %v4600_v35 = vmul.f32 0.33333334, %v4598_v11 }
 0xba4   :  { %v4602_v16 = vadd.f32 %v4600_v35, %v6224_v54 }
 0xba6   :  { %5528 = vmatmul.mubr.msk.f32.vlgmr.msra.gmra.mxu0 %vm62_vm0, %v4602_v16 }
 0xba7   :  { %5531 = vmatpush3.msra.mxu0 %v4695_v36 }
 0xc66   :  { %v5529_v39 = vpop.f32.mrf.mxu0 }
 0xc67   :  { %v4690_v40 = vadd.f32 %v5529_v39, %v4961_v63 }
 0xc68   :  { %v4684_v30 = vpop.f32.mrf.mxu0 }
 0xc69   :  { %v4685_v42 = vadd.f32 %v4961_v63, %v4684_v30  ;;  %v4694_v37 = vmax.f32 %v4690_v40, 0.0 }
 0xc6b   :  { %v4693_v43 = vmax.f32 %v4685_v42, 0.0 }
 0xc6d   :  { %5532 = vmatprep.mubr.msk.f32.mxu0 %vm424_vm2, %v4693_v43 }
 0xc6e   :  { %5533 = vmatmul.mubr.msk.f32.vlgmr.msra.gmra.mxu0 %vm424_vm2, %v4694_v37 }
 0xd2e   :  { %v5534_v54 = vpop.f32.mrf.mxu0 }
 0xd2f   :  { %4778 = vst [vmem:[%s6360_s12 + $0x8] sm:$0xff] %v5534_v54 }
 0xd30   :  { %v4768_v44 = vpop.f32.mrf.mxu0 }
 0xd31   :  { %4777 = vst [vmem:[%s6360_s12] sm:$0xff] %v4768_v44 }

</bundles_post_ra>
